<compile_context>
chip_gen: v6e
topology: v6e:2x2x1
jax: 0.10.0
libtpu: 0.0.40
codegen_flags: <defaults>
</compile_context>

<pallas_src>
import functools

import jax
import jax.numpy as jnp
import numpy as np
from jax.experimental import pallas as pl
from jax.experimental.pallas import tpu as pltpu

KSIZE = 7
PAD = KSIZE // 2


def _cbam_kernel(x_ref, w1t_ref, w2_ref, tapf_ref, o_ref, *, H, W, bt):
    """One grid step: bt images, NCHW flattened to (bt, C, H*W).

    x_ref:    (bt, C, HW)     images, H*W on the lane axis (lane dense)
    w1t_ref:  (C, Ch)         ca.fc[0].weight transposed  (Ch = C // 16)
    w2_ref:   (C, Ch)         ca.fc[2].weight (native torch layout)
    tapf_ref: (49, 2*bt, HW)  per-tap (weight * validity-mask) factors,
                              rows ordered [avg-branch x bt, max-branch x bt]
    o_ref:    (bt, C, HW)
    """
    C = x_ref.shape[1]
    HW = H * W
    Ch = w1t_ref.shape[1]

    xv = x_ref[...].astype(jnp.float32)                        # (bt, C, HW)

    # ---------------- Channel attention (C stays on sublanes) --------------
    avg_p = jnp.mean(xv, axis=2, keepdims=True)                # (bt, C, 1)
    max_p = jnp.max(xv, axis=2, keepdims=True)                 # (bt, C, 1)

    if C >= 128:
        # Large C: two real contractions beat the per-hidden-column loop.
        pools2d = jnp.concatenate([avg_p[..., 0], max_p[..., 0]], axis=0)  # (2*bt, C)
        w1t = w1t_ref[...].astype(jnp.float32)                             # (C, Ch)
        w2 = w2_ref[...].astype(jnp.float32)                               # (C, Ch)
        hidden = jnp.maximum(
            jnp.dot(pools2d, w1t, preferred_element_type=jnp.float32), 0.0)  # (2*bt, Ch)
        fc2 = jax.lax.dot_general(hidden, w2, (((1,), (1,)), ((), ())),
                                  preferred_element_type=jnp.float32)        # (2*bt, C)
        ca = jax.nn.sigmoid(fc2[:bt] + fc2[bt:])[:, :, None]                 # (bt, C, 1)
    else:
        # Tiny C (test shapes): keep C on sublanes end-to-end, no relayouts.
        pools = jnp.stack([avg_p, max_p], axis=0)               # (2, bt, C, 1)
        fc_out = jnp.zeros((2, bt, C, 1), jnp.float32)
        for j in range(Ch):                                      # Ch = C // 16 (tiny)
            w1_col = w1t_ref[:, j:j + 1].astype(jnp.float32)     # (C, 1)
            w2_col = w2_ref[:, j:j + 1].astype(jnp.float32)      # (C, 1)
            hj = jnp.maximum(
                jnp.sum(pools * w1_col, axis=2, keepdims=True), 0.0)   # (2, bt, 1, 1)
            fc_out = fc_out + hj * w2_col                         # (2, bt, C, 1)
        ca = jax.nn.sigmoid(fc_out[0] + fc_out[1])                # (bt, C, 1)

    out1 = xv * ca                                                # (bt, C, HW) lane dense

    # ---------------- Spatial attention (batched over bt) ------------------
    avg_s = jnp.mean(out1, axis=1)                                # (bt, HW) sublane reduce
    max_s = jnp.max(out1, axis=1)                                 # (bt, HW)
    maps = jnp.concatenate([avg_s, max_s], axis=0)                # (2*bt, HW) one slab

    acc = jnp.zeros((2 * bt, HW), jnp.float32)
    for kh in range(KSIZE):
        dh = kh - PAD
        for kw in range(KSIZE):
            dw = kw - PAD
            s = dh * W + dw                      # static flattened shift of this tap
            t = kh * KSIZE + kw
            # window[p] = maps[p + s]; circular wrap is killed by the validity
            # mask that is already folded into tapf.
            win = maps if s == 0 else pltpu.roll(maps, (-s) % HW, axis=1)
            acc = acc + win * tapf_ref[t]        # tapf = weight * validity (hoisted)
    conv = acc[:bt] + acc[bt:]                                    # (bt, HW): avg + max branch
    sa = jax.nn.sigmoid(conv)                                     # (bt, HW)

    o_ref[...] = (out1 * sa[:, None, :]).astype(o_ref.dtype)      # single lane-dense store


def _pick_block_batch(B, C, HW, vmem_budget_bytes):
    """Largest divisor of B whose f32 working set (~8x one block) fits the budget."""
    best = 1
    for d in range(1, B + 1):
        if B % d == 0 and 8 * d * C * HW * 4 <= vmem_budget_bytes:
            best = d
    return best


def cbam_forward(x, w1, w2, wsa):
    """CBAM forward.

    x:   (B, C, H, W)  NCHW, like the PyTorch module
    w1:  (C//16, C)    ca.fc[0].weight (1x1 conv, squeezed)
    w2:  (C, C//16)    ca.fc[2].weight (1x1 conv, squeezed)
    wsa: (2, 7, 7)     sa.conv1.weight (out-channel dim squeezed)
    """
    B, C, H, W = x.shape
    Ch = w1.shape[0]
    HW = H * W

    x_flat = x.reshape(B, C, HW)           # free: collapses contiguous dims
    w1t = jnp.transpose(w1)                # (C, Ch): keeps C on sublanes in-kernel

    # VMEM budget kept well under v7x's 64 MiB/TC physical VMEM (also fine for
    # v5e/v6e); maximize bt under it (extra grid steps only add overhead).
    VMEM_BUDGET = 40 * 2 ** 20
    if 8 * C * HW * 4 > VMEM_BUDGET:
        # TODO(synk): tile HW (with a PAD*W halo for the 7x7 conv) and/or C for
        # realistic CBAM shapes where a whole image block cannot fit in VMEM.
        raise NotImplementedError(
            "CBAM Pallas kernel: single-image block exceeds VMEM budget; "
            "HW/C tiling not implemented.")
    bt = _pick_block_batch(B, C, HW, VMEM_BUDGET)
    grid = (B // bt,)

    # Combined row+column validity mask of every 7x7 tap in the flattened
    # H*W domain (static numpy constants), folded with the conv weight ONCE
    # here and passed as a kernel input (cannot be captured inside the kernel).
    hh = np.arange(HW, dtype=np.int64) // W
    ww = np.arange(HW, dtype=np.int64) % W
    valid = np.zeros((KSIZE * KSIZE, HW), np.float32)
    for kh in range(KSIZE):
        for kw in range(KSIZE):
            dh, dw = kh - PAD, kw - PAD
            ok = (hh + dh >= 0) & (hh + dh < H) & (ww + dw >= 0) & (ww + dw < W)
            valid[kh * KSIZE + kw] = ok.astype(np.float32)

    wsa2 = wsa.reshape(2, KSIZE * KSIZE).astype(jnp.float32)                  # (2, 49)
    tapf = jnp.transpose(wsa2)[:, :, None] * jnp.asarray(valid)[:, None, :]   # (49, 2, HW)
    tapf = jnp.repeat(tapf, bt, axis=1)                                       # (49, 2*bt, HW)

    kernel = functools.partial(_cbam_kernel, H=H, W=W, bt=bt)

    block_bytes = bt * C * HW * 4
    tapf_bytes = KSIZE * KSIZE * 2 * bt * HW * 4
    vmem_limit = int(min(48 * 2 ** 20,
                         max(16 * 2 ** 20, 8 * block_bytes + 2 * tapf_bytes)))

    out_flat = pl.pallas_call(
        kernel,
        out_shape=jax.ShapeDtypeStruct((B, C, HW), x.dtype),
        grid_spec=pltpu.PrefetchScalarGridSpec(
            num_scalar_prefetch=0,
            grid=grid,
            in_specs=[
                pl.BlockSpec((bt, C, HW), lambda i: (i, 0, 0)),
                pl.BlockSpec((C, Ch), lambda i: (0, 0)),
                pl.BlockSpec((C, Ch), lambda i: (0, 0)),
                pl.BlockSpec((KSIZE * KSIZE, 2 * bt, HW), lambda i: (0, 0, 0)),
            ],
            out_specs=pl.BlockSpec((bt, C, HW), lambda i: (i, 0, 0)),
        ),
        compiler_params=pltpu.CompilerParams(
            # Batch steps are independent; neutral on single-TC v5e/v6e.
            dimension_semantics=("parallel",),
            vmem_limit_bytes=vmem_limit,
        ),
    )(x_flat, w1t, w2, tapf)

    return out_flat.reshape(B, C, H, W)


def cbam_ref(x, w1, w2, wsa):
    """Pure-JAX reference mirroring the PyTorch module exactly."""
    avg_p = jnp.mean(x, axis=(2, 3))                          # (B, C)
    max_p = jnp.max(x, axis=(2, 3))                           # (B, C)

    def fc(v):
        return jnp.maximum(v @ w1.T, 0.0) @ w2.T

    ca = jax.nn.sigmoid(fc(avg_p) + fc(max_p))                # (B, C)
    out1 = x * ca[:, :, None, None]

    avg_s = jnp.mean(out1, axis=1, keepdims=True)
    max_s = jnp.max(out1, axis=1, keepdims=True)
    feat = jnp.concatenate([avg_s, max_s], axis=1)            # (B, 2, H, W)
    conv = jax.lax.conv_general_dilated(
        feat, wsa[None], window_strides=(1, 1),
        padding=[(PAD, PAD), (PAD, PAD)],
        dimension_numbers=("NCHW", "OIHW", "NCHW"))
    return out1 * jax.nn.sigmoid(conv)


if __name__ == "__main__":
    # in_planes must be >= 16 since the fc bottleneck is in_planes // 16.
    key = jax.random.PRNGKey(0)

    def run_case(B, C, H, W, case_key):
        Ch = C // 16
        kx, k1, k2, k3 = jax.random.split(case_key, 4)
        x = jax.random.normal(kx, (B, C, H, W), jnp.float32)
        w1 = 0.1 * jax.random.normal(k1, (Ch, C), jnp.float32)           # fc[0].weight
        w2 = 0.1 * jax.random.normal(k2, (C, Ch), jnp.float32)           # fc[2].weight
        wsa = 0.1 * jax.random.normal(k3, (2, KSIZE, KSIZE), jnp.float32)  # conv1.weight[0]

        out = jax.block_until_ready(jax.jit(cbam_forward)(x, w1, w2, wsa))
        ref = cbam_ref(x, w1, w2, wsa)
        assert out.shape == (B, C, H, W)
        np.testing.assert_allclose(np.asarray(out), np.asarray(ref),
                                   rtol=1e-4, atol=1e-4)

    k_a, k_b = jax.random.split(key)
    run_case(2, 32, 16, 16, k_a)   # primary shape
    run_case(2, 32, 8, 32, k_b)    # H != W exercises the row/col validity-mask math
    print("KERNEL_OK")
</pallas_src>

<mosaic_0001>
module attributes {stable_mosaic.version = 11 : i64} {
  func.func @_cbam_kernel(%arg0: i32, %arg1: memref<2x32x256xf32, #tpu.memory_space<vmem>>, %arg2: memref<32x2xf32, #tpu.memory_space<vmem>>, %arg3: memref<32x2xf32, #tpu.memory_space<vmem>>, %arg4: memref<49x4x256xf32, #tpu.memory_space<vmem>>, %arg5: memref<2x32x256xf32, #tpu.memory_space<vmem>>) attributes {dimension_semantics = [#tpu.dimension_semantics<parallel>], iteration_bounds = array<i64: 1>, scalar_prefetch = 0 : i64, scratch_operands = 0 : i64, tpu.core_type = #tpu.core_type<tc>, window_params = [{transform_indices = @transform_0, window_bounds = array<i64: 2, 32, 256>}, {pipeline_mode = #tpu.pipeline_mode<synchronous>, transform_indices = @transform_1, window_bounds = array<i64: 32, 2>}, {pipeline_mode = #tpu.pipeline_mode<synchronous>, transform_indices = @transform_2, window_bounds = array<i64: 32, 2>}, {pipeline_mode = #tpu.pipeline_mode<synchronous>, transform_indices = @transform_3, window_bounds = array<i64: 49, 4, 256>}, {transform_indices = @transform_4, window_bounds = array<i64: 2, 32, 256>}]} {
    %c0 = arith.constant 0 : index
    %c0_0 = arith.constant 0 : index
    %c0_1 = arith.constant 0 : index
    %0 = vector.load %arg1[%c0, %c0_0, %c0_1] : memref<2x32x256xf32, #tpu.memory_space<vmem>>, vector<2x32x256xf32>
    %cst = arith.constant dense<0.000000e+00> : vector<2x32xf32>
    %1 = vector.multi_reduction <add>, %0, %cst [2] : vector<2x32x256xf32> to vector<2x32xf32>
    %2 = vector.shape_cast %1 : vector<2x32xf32> to vector<2x32x1xf32>
    %cst_2 = arith.constant 2.560000e+02 : f32
    %3 = vector.broadcast %cst_2 : f32 to vector<2x32x1xf32>
    %4 = arith.divf %2, %3 : vector<2x32x1xf32>
    %cst_3 = arith.constant dense<0xFF800000> : vector<2x32xf32>
    %5 = vector.multi_reduction <maximumf>, %0, %cst_3 [2] : vector<2x32x256xf32> to vector<2x32xf32>
    %6 = vector.shape_cast %5 : vector<2x32xf32> to vector<2x32x1xf32>
    %7 = vector.shape_cast %4 : vector<2x32x1xf32> to vector<1x2x32x1xf32>
    %8 = vector.shape_cast %6 : vector<2x32x1xf32> to vector<1x2x32x1xf32>
    %9 = tpu.concatenate %7, %8 in 0 : vector<1x2x32x1xf32>, vector<1x2x32x1xf32> -> vector<2x2x32x1xf32>
    %cst_4 = arith.constant 0.000000e+00 : f32
    %10 = vector.broadcast %cst_4 : f32 to vector<2x2x32x1xf32>
    %c0_5 = arith.constant 0 : index
    %c0_6 = arith.constant 0 : index
    %11 = vector.load %arg2[%c0_5, %c0_6] : memref<32x2xf32, #tpu.memory_space<vmem>>, vector<32x1xf32>
    %c0_7 = arith.constant 0 : index
    %c0_8 = arith.constant 0 : index
    %12 = vector.load %arg3[%c0_7, %c0_8] : memref<32x2xf32, #tpu.memory_space<vmem>>, vector<32x1xf32>
    %13 = vector.shape_cast %11 : vector<32x1xf32> to vector<1x1x32x1xf32>
    %14 = vector.broadcast %13 : vector<1x1x32x1xf32> to vector<2x2x32x1xf32>
    %15 = arith.mulf %9, %14 : vector<2x2x32x1xf32>
    %cst_9 = arith.constant dense<0.000000e+00> : vector<2x2x1xf32>
    %16 = vector.multi_reduction <add>, %15, %cst_9 [2] : vector<2x2x32x1xf32> to vector<2x2x1xf32>
    %17 = vector.shape_cast %16 : vector<2x2x1xf32> to vector<2x2x1x1xf32>
    %cst_10 = arith.constant 0.000000e+00 : f32
    %18 = vector.broadcast %cst_10 : f32 to vector<2x2x1x1xf32>
    %19 = arith.maximumf %17, %18 : vector<2x2x1x1xf32>
    %20 = vector.shape_cast %12 : vector<32x1xf32> to vector<1x1x32x1xf32>
    %21 = vector.broadcast %19 : vector<2x2x1x1xf32> to vector<2x2x32x1xf32>
    %22 = vector.broadcast %20 : vector<1x1x32x1xf32> to vector<2x2x32x1xf32>
    %23 = arith.mulf %21, %22 : vector<2x2x32x1xf32>
    %24 = arith.addf %10, %23 : vector<2x2x32x1xf32>
    %c0_11 = arith.constant 0 : index
    %c1 = arith.constant 1 : index
    %25 = vector.load %arg2[%c0_11, %c1] : memref<32x2xf32, #tpu.memory_space<vmem>>, vector<32x1xf32>
    %c0_12 = arith.constant 0 : index
    %c1_13 = arith.constant 1 : index
    %26 = vector.load %arg3[%c0_12, %c1_13] : memref<32x2xf32, #tpu.memory_space<vmem>>, vector<32x1xf32>
    %27 = vector.shape_cast %25 : vector<32x1xf32> to vector<1x1x32x1xf32>
    %28 = vector.broadcast %27 : vector<1x1x32x1xf32> to vector<2x2x32x1xf32>
    %29 = arith.mulf %9, %28 : vector<2x2x32x1xf32>
    %cst_14 = arith.constant dense<0.000000e+00> : vector<2x2x1xf32>
    %30 = vector.multi_reduction <add>, %29, %cst_14 [2] : vector<2x2x32x1xf32> to vector<2x2x1xf32>
    %31 = vector.shape_cast %30 : vector<2x2x1xf32> to vector<2x2x1x1xf32>
    %cst_15 = arith.constant 0.000000e+00 : f32
    %32 = vector.broadcast %cst_15 : f32 to vector<2x2x1x1xf32>
    %33 = arith.maximumf %31, %32 : vector<2x2x1x1xf32>
    %34 = vector.shape_cast %26 : vector<32x1xf32> to vector<1x1x32x1xf32>
    %35 = vector.broadcast %33 : vector<2x2x1x1xf32> to vector<2x2x32x1xf32>
    %36 = vector.broadcast %34 : vector<1x1x32x1xf32> to vector<2x2x32x1xf32>
    %37 = arith.mulf %35, %36 : vector<2x2x32x1xf32>
    %38 = arith.addf %24, %37 : vector<2x2x32x1xf32>
    %39 = vector.extract_strided_slice %38 {offsets = [0, 0, 0, 0], sizes = [1, 2, 32, 1], strides = [1, 1, 1, 1]} : vector<2x2x32x1xf32> to vector<1x2x32x1xf32>
    %40 = vector.shape_cast %39 : vector<1x2x32x1xf32> to vector<2x32x1xf32>
    %41 = vector.extract_strided_slice %38 {offsets = [1, 0, 0, 0], sizes = [1, 2, 32, 1], strides = [1, 1, 1, 1]} : vector<2x2x32x1xf32> to vector<1x2x32x1xf32>
    %42 = vector.shape_cast %41 : vector<1x2x32x1xf32> to vector<2x32x1xf32>
    %43 = arith.addf %40, %42 : vector<2x32x1xf32>
    %44 = arith.negf %43 : vector<2x32x1xf32>
    %45 = math.exp %44 : vector<2x32x1xf32>
    %cst_16 = arith.constant 1.000000e+00 : f32
    %46 = vector.broadcast %cst_16 : f32 to vector<2x32x1xf32>
    %47 = arith.addf %46, %45 : vector<2x32x1xf32>
    %48 = arith.divf %46, %47 : vector<2x32x1xf32>
    %49 = vector.broadcast %48 : vector<2x32x1xf32> to vector<2x32x256xf32>
    %50 = arith.mulf %0, %49 : vector<2x32x256xf32>
    %cst_17 = arith.constant dense<0.000000e+00> : vector<2x256xf32>
    %51 = vector.multi_reduction <add>, %50, %cst_17 [1] : vector<2x32x256xf32> to vector<2x256xf32>
    %cst_18 = arith.constant 3.200000e+01 : f32
    %52 = vector.broadcast %cst_18 : f32 to vector<2x256xf32>
    %53 = arith.divf %51, %52 : vector<2x256xf32>
    %cst_19 = arith.constant dense<0xFF800000> : vector<2x256xf32>
    %54 = vector.multi_reduction <maximumf>, %50, %cst_19 [1] : vector<2x32x256xf32> to vector<2x256xf32>
    %55 = tpu.concatenate %53, %54 in 0 : vector<2x256xf32>, vector<2x256xf32> -> vector<4x256xf32>
    %cst_20 = arith.constant 0.000000e+00 : f32
    %56 = vector.broadcast %cst_20 : f32 to vector<4x256xf32>
    %c51_i32 = arith.constant 51 : i32
    %57 = tpu.dynamic_rotate %55 by %c51_i32 dim 1 : vector<4x256xf32>, i32 -> vector<4x256xf32>
    %c0_21 = arith.constant 0 : index
    %c0_22 = arith.constant 0 : index
    %c0_23 = arith.constant 0 : index
    %58 = vector.load %arg4[%c0_21, %c0_22, %c0_23] : memref<49x4x256xf32, #tpu.memory_space<vmem>>, vector<1x4x256xf32>
    %59 = vector.shape_cast %58 : vector<1x4x256xf32> to vector<4x256xf32>
    %60 = arith.mulf %57, %59 : vector<4x256xf32>
    %61 = arith.addf %56, %60 : vector<4x256xf32>
    %c50_i32 = arith.constant 50 : i32
    %62 = tpu.dynamic_rotate %55 by %c50_i32 dim 1 : vector<4x256xf32>, i32 -> vector<4x256xf32>
    %c1_24 = arith.constant 1 : index
    %c0_25 = arith.constant 0 : index
    %c0_26 = arith.constant 0 : index
    %63 = vector.load %arg4[%c1_24, %c0_25, %c0_26] : memref<49x4x256xf32, #tpu.memory_space<vmem>>, vector<1x4x256xf32>
    %64 = vector.shape_cast %63 : vector<1x4x256xf32> to vector<4x256xf32>
    %65 = arith.mulf %62, %64 : vector<4x256xf32>
    %66 = arith.addf %61, %65 : vector<4x256xf32>
    %c49_i32 = arith.constant 49 : i32
    %67 = tpu.dynamic_rotate %55 by %c49_i32 dim 1 : vector<4x256xf32>, i32 -> vector<4x256xf32>
    %c2 = arith.constant 2 : index
    %c0_27 = arith.constant 0 : index
    %c0_28 = arith.constant 0 : index
    %68 = vector.load %arg4[%c2, %c0_27, %c0_28] : memref<49x4x256xf32, #tpu.memory_space<vmem>>, vector<1x4x256xf32>
    %69 = vector.shape_cast %68 : vector<1x4x256xf32> to vector<4x256xf32>
    %70 = arith.mulf %67, %69 : vector<4x256xf32>
    %71 = arith.addf %66, %70 : vector<4x256xf32>
    %c48_i32 = arith.constant 48 : i32
    %72 = tpu.dynamic_rotate %55 by %c48_i32 dim 1 : vector<4x256xf32>, i32 -> vector<4x256xf32>
    %c3 = arith.constant 3 : index
    %c0_29 = arith.constant 0 : index
    %c0_30 = arith.constant 0 : index
    %73 = vector.load %arg4[%c3, %c0_29, %c0_30] : memref<49x4x256xf32, #tpu.memory_space<vmem>>, vector<1x4x256xf32>
    %74 = vector.shape_cast %73 : vector<1x4x256xf32> to vector<4x256xf32>
    %75 = arith.mulf %72, %74 : vector<4x256xf32>
    %76 = arith.addf %71, %75 : vector<4x256xf32>
    %c47_i32 = arith.constant 47 : i32
    %77 = tpu.dynamic_rotate %55 by %c47_i32 dim 1 : vector<4x256xf32>, i32 -> vector<4x256xf32>
    %c4 = arith.constant 4 : index
    %c0_31 = arith.constant 0 : index
    %c0_32 = arith.constant 0 : index
    %78 = vector.load %arg4[%c4, %c0_31, %c0_32] : memref<49x4x256xf32, #tpu.memory_space<vmem>>, vector<1x4x256xf32>
    %79 = vector.shape_cast %78 : vector<1x4x256xf32> to vector<4x256xf32>
    %80 = arith.mulf %77, %79 : vector<4x256xf32>
    %81 = arith.addf %76, %80 : vector<4x256xf32>
    %c46_i32 = arith.constant 46 : i32
    %82 = tpu.dynamic_rotate %55 by %c46_i32 dim 1 : vector<4x256xf32>, i32 -> vector<4x256xf32>
    %c5 = arith.constant 5 : index
    %c0_33 = arith.constant 0 : index
    %c0_34 = arith.constant 0 : index
    %83 = vector.load %arg4[%c5, %c0_33, %c0_34] : memref<49x4x256xf32, #tpu.memory_space<vmem>>, vector<1x4x256xf32>
    %84 = vector.shape_cast %83 : vector<1x4x256xf32> to vector<4x256xf32>
    %85 = arith.mulf %82, %84 : vector<4x256xf32>
    %86 = arith.addf %81, %85 : vector<4x256xf32>
    %c45_i32 = arith.constant 45 : i32
    %87 = tpu.dynamic_rotate %55 by %c45_i32 dim 1 : vector<4x256xf32>, i32 -> vector<4x256xf32>
    %c6 = arith.constant 6 : index
    %c0_35 = arith.constant 0 : index
    %c0_36 = arith.constant 0 : index
    %88 = vector.load %arg4[%c6, %c0_35, %c0_36] : memref<49x4x256xf32, #tpu.memory_space<vmem>>, vector<1x4x256xf32>
    %89 = vector.shape_cast %88 : vector<1x4x256xf32> to vector<4x256xf32>
    %90 = arith.mulf %87, %89 : vector<4x256xf32>
    %91 = arith.addf %86, %90 : vector<4x256xf32>
    %c35_i32 = arith.constant 35 : i32
    %92 = tpu.dynamic_rotate %55 by %c35_i32 dim 1 : vector<4x256xf32>, i32 -> vector<4x256xf32>
    %c7 = arith.constant 7 : index
    %c0_37 = arith.constant 0 : index
    %c0_38 = arith.constant 0 : index
    %93 = vector.load %arg4[%c7, %c0_37, %c0_38] : memref<49x4x256xf32, #tpu.memory_space<vmem>>, vector<1x4x256xf32>
    %94 = vector.shape_cast %93 : vector<1x4x256xf32> to vector<4x256xf32>
    %95 = arith.mulf %92, %94 : vector<4x256xf32>
    %96 = arith.addf %91, %95 : vector<4x256xf32>
    %c34_i32 = arith.constant 34 : i32
    %97 = tpu.dynamic_rotate %55 by %c34_i32 dim 1 : vector<4x256xf32>, i32 -> vector<4x256xf32>
    %c8 = arith.constant 8 : index
    %c0_39 = arith.constant 0 : index
    %c0_40 = arith.constant 0 : index
    %98 = vector.load %arg4[%c8, %c0_39, %c0_40] : memref<49x4x256xf32, #tpu.memory_space<vmem>>, vector<1x4x256xf32>
    %99 = vector.shape_cast %98 : vector<1x4x256xf32> to vector<4x256xf32>
    %100 = arith.mulf %97, %99 : vector<4x256xf32>
    %101 = arith.addf %96, %100 : vector<4x256xf32>
    %c33_i32 = arith.constant 33 : i32
    %102 = tpu.dynamic_rotate %55 by %c33_i32 dim 1 : vector<4x256xf32>, i32 -> vector<4x256xf32>
    %c9 = arith.constant 9 : index
    %c0_41 = arith.constant 0 : index
    %c0_42 = arith.constant 0 : index
    %103 = vector.load %arg4[%c9, %c0_41, %c0_42] : memref<49x4x256xf32, #tpu.memory_space<vmem>>, vector<1x4x256xf32>
    %104 = vector.shape_cast %103 : vector<1x4x256xf32> to vector<4x256xf32>
    %105 = arith.mulf %102, %104 : vector<4x256xf32>
    %106 = arith.addf %101, %105 : vector<4x256xf32>
    %c32_i32 = arith.constant 32 : i32
    %107 = tpu.dynamic_rotate %55 by %c32_i32 dim 1 : vector<4x256xf32>, i32 -> vector<4x256xf32>
    %c10 = arith.constant 10 : index
    %c0_43 = arith.constant 0 : index
    %c0_44 = arith.constant 0 : index
    %108 = vector.load %arg4[%c10, %c0_43, %c0_44] : memref<49x4x256xf32, #tpu.memory_space<vmem>>, vector<1x4x256xf32>
    %109 = vector.shape_cast %108 : vector<1x4x256xf32> to vector<4x256xf32>
    %110 = arith.mulf %107, %109 : vector<4x256xf32>
    %111 = arith.addf %106, %110 : vector<4x256xf32>
    %c31_i32 = arith.constant 31 : i32
    %112 = tpu.dynamic_rotate %55 by %c31_i32 dim 1 : vector<4x256xf32>, i32 -> vector<4x256xf32>
    %c11 = arith.constant 11 : index
    %c0_45 = arith.constant 0 : index
    %c0_46 = arith.constant 0 : index
    %113 = vector.load %arg4[%c11, %c0_45, %c0_46] : memref<49x4x256xf32, #tpu.memory_space<vmem>>, vector<1x4x256xf32>
    %114 = vector.shape_cast %113 : vector<1x4x256xf32> to vector<4x256xf32>
    %115 = arith.mulf %112, %114 : vector<4x256xf32>
    %116 = arith.addf %111, %115 : vector<4x256xf32>
    %c30_i32 = arith.constant 30 : i32
    %117 = tpu.dynamic_rotate %55 by %c30_i32 dim 1 : vector<4x256xf32>, i32 -> vector<4x256xf32>
    %c12 = arith.constant 12 : index
    %c0_47 = arith.constant 0 : index
    %c0_48 = arith.constant 0 : index
    %118 = vector.load %arg4[%c12, %c0_47, %c0_48] : memref<49x4x256xf32, #tpu.memory_space<vmem>>, vector<1x4x256xf32>
    %119 = vector.shape_cast %118 : vector<1x4x256xf32> to vector<4x256xf32>
    %120 = arith.mulf %117, %119 : vector<4x256xf32>
    %121 = arith.addf %116, %120 : vector<4x256xf32>
    %c29_i32 = arith.constant 29 : i32
    %122 = tpu.dynamic_rotate %55 by %c29_i32 dim 1 : vector<4x256xf32>, i32 -> vector<4x256xf32>
    %c13 = arith.constant 13 : index
    %c0_49 = arith.constant 0 : index
    %c0_50 = arith.constant 0 : index
    %123 = vector.load %arg4[%c13, %c0_49, %c0_50] : memref<49x4x256xf32, #tpu.memory_space<vmem>>, vector<1x4x256xf32>
    %124 = vector.shape_cast %123 : vector<1x4x256xf32> to vector<4x256xf32>
    %125 = arith.mulf %122, %124 : vector<4x256xf32>
    %126 = arith.addf %121, %125 : vector<4x256xf32>
    %c19_i32 = arith.constant 19 : i32
    %127 = tpu.dynamic_rotate %55 by %c19_i32 dim 1 : vector<4x256xf32>, i32 -> vector<4x256xf32>
    %c14 = arith.constant 14 : index
    %c0_51 = arith.constant 0 : index
    %c0_52 = arith.constant 0 : index
    %128 = vector.load %arg4[%c14, %c0_51, %c0_52] : memref<49x4x256xf32, #tpu.memory_space<vmem>>, vector<1x4x256xf32>
    %129 = vector.shape_cast %128 : vector<1x4x256xf32> to vector<4x256xf32>
    %130 = arith.mulf %127, %129 : vector<4x256xf32>
    %131 = arith.addf %126, %130 : vector<4x256xf32>
    %c18_i32 = arith.constant 18 : i32
    %132 = tpu.dynamic_rotate %55 by %c18_i32 dim 1 : vector<4x256xf32>, i32 -> vector<4x256xf32>
    %c15 = arith.constant 15 : index
    %c0_53 = arith.constant 0 : index
    %c0_54 = arith.constant 0 : index
    %133 = vector.load %arg4[%c15, %c0_53, %c0_54] : memref<49x4x256xf32, #tpu.memory_space<vmem>>, vector<1x4x256xf32>
    %134 = vector.shape_cast %133 : vector<1x4x256xf32> to vector<4x256xf32>
    %135 = arith.mulf %132, %134 : vector<4x256xf32>
    %136 = arith.addf %131, %135 : vector<4x256xf32>
    %c17_i32 = arith.constant 17 : i32
    %137 = tpu.dynamic_rotate %55 by %c17_i32 dim 1 : vector<4x256xf32>, i32 -> vector<4x256xf32>
    %c16 = arith.constant 16 : index
    %c0_55 = arith.constant 0 : index
    %c0_56 = arith.constant 0 : index
    %138 = vector.load %arg4[%c16, %c0_55, %c0_56] : memref<49x4x256xf32, #tpu.memory_space<vmem>>, vector<1x4x256xf32>
    %139 = vector.shape_cast %138 : vector<1x4x256xf32> to vector<4x256xf32>
    %140 = arith.mulf %137, %139 : vector<4x256xf32>
    %141 = arith.addf %136, %140 : vector<4x256xf32>
    %c16_i32 = arith.constant 16 : i32
    %142 = tpu.dynamic_rotate %55 by %c16_i32 dim 1 : vector<4x256xf32>, i32 -> vector<4x256xf32>
    %c17 = arith.constant 17 : index
    %c0_57 = arith.constant 0 : index
    %c0_58 = arith.constant 0 : index
    %143 = vector.load %arg4[%c17, %c0_57, %c0_58] : memref<49x4x256xf32, #tpu.memory_space<vmem>>, vector<1x4x256xf32>
    %144 = vector.shape_cast %143 : vector<1x4x256xf32> to vector<4x256xf32>
    %145 = arith.mulf %142, %144 : vector<4x256xf32>
    %146 = arith.addf %141, %145 : vector<4x256xf32>
    %c15_i32 = arith.constant 15 : i32
    %147 = tpu.dynamic_rotate %55 by %c15_i32 dim 1 : vector<4x256xf32>, i32 -> vector<4x256xf32>
    %c18 = arith.constant 18 : index
    %c0_59 = arith.constant 0 : index
    %c0_60 = arith.constant 0 : index
    %148 = vector.load %arg4[%c18, %c0_59, %c0_60] : memref<49x4x256xf32, #tpu.memory_space<vmem>>, vector<1x4x256xf32>
    %149 = vector.shape_cast %148 : vector<1x4x256xf32> to vector<4x256xf32>
    %150 = arith.mulf %147, %149 : vector<4x256xf32>
    %151 = arith.addf %146, %150 : vector<4x256xf32>
    %c14_i32 = arith.constant 14 : i32
    %152 = tpu.dynamic_rotate %55 by %c14_i32 dim 1 : vector<4x256xf32>, i32 -> vector<4x256xf32>
    %c19 = arith.constant 19 : index
    %c0_61 = arith.constant 0 : index
    %c0_62 = arith.constant 0 : index
    %153 = vector.load %arg4[%c19, %c0_61, %c0_62] : memref<49x4x256xf32, #tpu.memory_space<vmem>>, vector<1x4x256xf32>
    %154 = vector.shape_cast %153 : vector<1x4x256xf32> to vector<4x256xf32>
    %155 = arith.mulf %152, %154 : vector<4x256xf32>
    %156 = arith.addf %151, %155 : vector<4x256xf32>
    %c13_i32 = arith.constant 13 : i32
    %157 = tpu.dynamic_rotate %55 by %c13_i32 dim 1 : vector<4x256xf32>, i32 -> vector<4x256xf32>
    %c20 = arith.constant 20 : index
    %c0_63 = arith.constant 0 : index
    %c0_64 = arith.constant 0 : index
    %158 = vector.load %arg4[%c20, %c0_63, %c0_64] : memref<49x4x256xf32, #tpu.memory_space<vmem>>, vector<1x4x256xf32>
    %159 = vector.shape_cast %158 : vector<1x4x256xf32> to vector<4x256xf32>
    %160 = arith.mulf %157, %159 : vector<4x256xf32>
    %161 = arith.addf %156, %160 : vector<4x256xf32>
    %c3_i32 = arith.constant 3 : i32
    %162 = tpu.dynamic_rotate %55 by %c3_i32 dim 1 : vector<4x256xf32>, i32 -> vector<4x256xf32>
    %c21 = arith.constant 21 : index
    %c0_65 = arith.constant 0 : index
    %c0_66 = arith.constant 0 : index
    %163 = vector.load %arg4[%c21, %c0_65, %c0_66] : memref<49x4x256xf32, #tpu.memory_space<vmem>>, vector<1x4x256xf32>
    %164 = vector.shape_cast %163 : vector<1x4x256xf32> to vector<4x256xf32>
    %165 = arith.mulf %162, %164 : vector<4x256xf32>
    %166 = arith.addf %161, %165 : vector<4x256xf32>
    %c2_i32 = arith.constant 2 : i32
    %167 = tpu.dynamic_rotate %55 by %c2_i32 dim 1 : vector<4x256xf32>, i32 -> vector<4x256xf32>
    %c22 = arith.constant 22 : index
    %c0_67 = arith.constant 0 : index
    %c0_68 = arith.constant 0 : index
    %168 = vector.load %arg4[%c22, %c0_67, %c0_68] : memref<49x4x256xf32, #tpu.memory_space<vmem>>, vector<1x4x256xf32>
    %169 = vector.shape_cast %168 : vector<1x4x256xf32> to vector<4x256xf32>
    %170 = arith.mulf %167, %169 : vector<4x256xf32>
    %171 = arith.addf %166, %170 : vector<4x256xf32>
    %c1_i32 = arith.constant 1 : i32
    %172 = tpu.dynamic_rotate %55 by %c1_i32 dim 1 : vector<4x256xf32>, i32 -> vector<4x256xf32>
    %c23 = arith.constant 23 : index
    %c0_69 = arith.constant 0 : index
    %c0_70 = arith.constant 0 : index
    %173 = vector.load %arg4[%c23, %c0_69, %c0_70] : memref<49x4x256xf32, #tpu.memory_space<vmem>>, vector<1x4x256xf32>
    %174 = vector.shape_cast %173 : vector<1x4x256xf32> to vector<4x256xf32>
    %175 = arith.mulf %172, %174 : vector<4x256xf32>
    %176 = arith.addf %171, %175 : vector<4x256xf32>
    %c24 = arith.constant 24 : index
    %c0_71 = arith.constant 0 : index
    %c0_72 = arith.constant 0 : index
    %177 = vector.load %arg4[%c24, %c0_71, %c0_72] : memref<49x4x256xf32, #tpu.memory_space<vmem>>, vector<1x4x256xf32>
    %178 = vector.shape_cast %177 : vector<1x4x256xf32> to vector<4x256xf32>
    %179 = arith.mulf %55, %178 : vector<4x256xf32>
    %180 = arith.addf %176, %179 : vector<4x256xf32>
    %c255_i32 = arith.constant 255 : i32
    %181 = tpu.dynamic_rotate %55 by %c255_i32 dim 1 : vector<4x256xf32>, i32 -> vector<4x256xf32>
    %c25 = arith.constant 25 : index
    %c0_73 = arith.constant 0 : index
    %c0_74 = arith.constant 0 : index
    %182 = vector.load %arg4[%c25, %c0_73, %c0_74] : memref<49x4x256xf32, #tpu.memory_space<vmem>>, vector<1x4x256xf32>
    %183 = vector.shape_cast %182 : vector<1x4x256xf32> to vector<4x256xf32>
    %184 = arith.mulf %181, %183 : vector<4x256xf32>
    %185 = arith.addf %180, %184 : vector<4x256xf32>
    %c254_i32 = arith.constant 254 : i32
    %186 = tpu.dynamic_rotate %55 by %c254_i32 dim 1 : vector<4x256xf32>, i32 -> vector<4x256xf32>
    %c26 = arith.constant 26 : index
    %c0_75 = arith.constant 0 : index
    %c0_76 = arith.constant 0 : index
    %187 = vector.load %arg4[%c26, %c0_75, %c0_76] : memref<49x4x256xf32, #tpu.memory_space<vmem>>, vector<1x4x256xf32>
    %188 = vector.shape_cast %187 : vector<1x4x256xf32> to vector<4x256xf32>
    %189 = arith.mulf %186, %188 : vector<4x256xf32>
    %190 = arith.addf %185, %189 : vector<4x256xf32>
    %c253_i32 = arith.constant 253 : i32
    %191 = tpu.dynamic_rotate %55 by %c253_i32 dim 1 : vector<4x256xf32>, i32 -> vector<4x256xf32>
    %c27 = arith.constant 27 : index
    %c0_77 = arith.constant 0 : index
    %c0_78 = arith.constant 0 : index
    %192 = vector.load %arg4[%c27, %c0_77, %c0_78] : memref<49x4x256xf32, #tpu.memory_space<vmem>>, vector<1x4x256xf32>
    %193 = vector.shape_cast %192 : vector<1x4x256xf32> to vector<4x256xf32>
    %194 = arith.mulf %191, %193 : vector<4x256xf32>
    %195 = arith.addf %190, %194 : vector<4x256xf32>
    %c243_i32 = arith.constant 243 : i32
    %196 = tpu.dynamic_rotate %55 by %c243_i32 dim 1 : vector<4x256xf32>, i32 -> vector<4x256xf32>
    %c28 = arith.constant 28 : index
    %c0_79 = arith.constant 0 : index
    %c0_80 = arith.constant 0 : index
    %197 = vector.load %arg4[%c28, %c0_79, %c0_80] : memref<49x4x256xf32, #tpu.memory_space<vmem>>, vector<1x4x256xf32>
    %198 = vector.shape_cast %197 : vector<1x4x256xf32> to vector<4x256xf32>
    %199 = arith.mulf %196, %198 : vector<4x256xf32>
    %200 = arith.addf %195, %199 : vector<4x256xf32>
    %c242_i32 = arith.constant 242 : i32
    %201 = tpu.dynamic_rotate %55 by %c242_i32 dim 1 : vector<4x256xf32>, i32 -> vector<4x256xf32>
    %c29 = arith.constant 29 : index
    %c0_81 = arith.constant 0 : index
    %c0_82 = arith.constant 0 : index
    %202 = vector.load %arg4[%c29, %c0_81, %c0_82] : memref<49x4x256xf32, #tpu.memory_space<vmem>>, vector<1x4x256xf32>
    %203 = vector.shape_cast %202 : vector<1x4x256xf32> to vector<4x256xf32>
    %204 = arith.mulf %201, %203 : vector<4x256xf32>
    %205 = arith.addf %200, %204 : vector<4x256xf32>
    %c241_i32 = arith.constant 241 : i32
    %206 = tpu.dynamic_rotate %55 by %c241_i32 dim 1 : vector<4x256xf32>, i32 -> vector<4x256xf32>
    %c30 = arith.constant 30 : index
    %c0_83 = arith.constant 0 : index
    %c0_84 = arith.constant 0 : index
    %207 = vector.load %arg4[%c30, %c0_83, %c0_84] : memref<49x4x256xf32, #tpu.memory_space<vmem>>, vector<1x4x256xf32>
    %208 = vector.shape_cast %207 : vector<1x4x256xf32> to vector<4x256xf32>
    %209 = arith.mulf %206, %208 : vector<4x256xf32>
    %210 = arith.addf %205, %209 : vector<4x256xf32>
    %c240_i32 = arith.constant 240 : i32
    %211 = tpu.dynamic_rotate %55 by %c240_i32 dim 1 : vector<4x256xf32>, i32 -> vector<4x256xf32>
    %c31 = arith.constant 31 : index
    %c0_85 = arith.constant 0 : index
    %c0_86 = arith.constant 0 : index
    %212 = vector.load %arg4[%c31, %c0_85, %c0_86] : memref<49x4x256xf32, #tpu.memory_space<vmem>>, vector<1x4x256xf32>
    %213 = vector.shape_cast %212 : vector<1x4x256xf32> to vector<4x256xf32>
    %214 = arith.mulf %211, %213 : vector<4x256xf32>
    %215 = arith.addf %210, %214 : vector<4x256xf32>
    %c239_i32 = arith.constant 239 : i32
    %216 = tpu.dynamic_rotate %55 by %c239_i32 dim 1 : vector<4x256xf32>, i32 -> vector<4x256xf32>
    %c32 = arith.constant 32 : index
    %c0_87 = arith.constant 0 : index
    %c0_88 = arith.constant 0 : index
    %217 = vector.load %arg4[%c32, %c0_87, %c0_88] : memref<49x4x256xf32, #tpu.memory_space<vmem>>, vector<1x4x256xf32>
    %218 = vector.shape_cast %217 : vector<1x4x256xf32> to vector<4x256xf32>
    %219 = arith.mulf %216, %218 : vector<4x256xf32>
    %220 = arith.addf %215, %219 : vector<4x256xf32>
    %c238_i32 = arith.constant 238 : i32
    %221 = tpu.dynamic_rotate %55 by %c238_i32 dim 1 : vector<4x256xf32>, i32 -> vector<4x256xf32>
    %c33 = arith.constant 33 : index
    %c0_89 = arith.constant 0 : index
    %c0_90 = arith.constant 0 : index
    %222 = vector.load %arg4[%c33, %c0_89, %c0_90] : memref<49x4x256xf32, #tpu.memory_space<vmem>>, vector<1x4x256xf32>
    %223 = vector.shape_cast %222 : vector<1x4x256xf32> to vector<4x256xf32>
    %224 = arith.mulf %221, %223 : vector<4x256xf32>
    %225 = arith.addf %220, %224 : vector<4x256xf32>
    %c237_i32 = arith.constant 237 : i32
    %226 = tpu.dynamic_rotate %55 by %c237_i32 dim 1 : vector<4x256xf32>, i32 -> vector<4x256xf32>
    %c34 = arith.constant 34 : index
    %c0_91 = arith.constant 0 : index
    %c0_92 = arith.constant 0 : index
    %227 = vector.load %arg4[%c34, %c0_91, %c0_92] : memref<49x4x256xf32, #tpu.memory_space<vmem>>, vector<1x4x256xf32>
    %228 = vector.shape_cast %227 : vector<1x4x256xf32> to vector<4x256xf32>
    %229 = arith.mulf %226, %228 : vector<4x256xf32>
    %230 = arith.addf %225, %229 : vector<4x256xf32>
    %c227_i32 = arith.constant 227 : i32
    %231 = tpu.dynamic_rotate %55 by %c227_i32 dim 1 : vector<4x256xf32>, i32 -> vector<4x256xf32>
    %c35 = arith.constant 35 : index
    %c0_93 = arith.constant 0 : index
    %c0_94 = arith.constant 0 : index
    %232 = vector.load %arg4[%c35, %c0_93, %c0_94] : memref<49x4x256xf32, #tpu.memory_space<vmem>>, vector<1x4x256xf32>
    %233 = vector.shape_cast %232 : vector<1x4x256xf32> to vector<4x256xf32>
    %234 = arith.mulf %231, %233 : vector<4x256xf32>
    %235 = arith.addf %230, %234 : vector<4x256xf32>
    %c226_i32 = arith.constant 226 : i32
    %236 = tpu.dynamic_rotate %55 by %c226_i32 dim 1 : vector<4x256xf32>, i32 -> vector<4x256xf32>
    %c36 = arith.constant 36 : index
    %c0_95 = arith.constant 0 : index
    %c0_96 = arith.constant 0 : index
    %237 = vector.load %arg4[%c36, %c0_95, %c0_96] : memref<49x4x256xf32, #tpu.memory_space<vmem>>, vector<1x4x256xf32>
    %238 = vector.shape_cast %237 : vector<1x4x256xf32> to vector<4x256xf32>
    %239 = arith.mulf %236, %238 : vector<4x256xf32>
    %240 = arith.addf %235, %239 : vector<4x256xf32>
    %c225_i32 = arith.constant 225 : i32
    %241 = tpu.dynamic_rotate %55 by %c225_i32 dim 1 : vector<4x256xf32>, i32 -> vector<4x256xf32>
    %c37 = arith.constant 37 : index
    %c0_97 = arith.constant 0 : index
    %c0_98 = arith.constant 0 : index
    %242 = vector.load %arg4[%c37, %c0_97, %c0_98] : memref<49x4x256xf32, #tpu.memory_space<vmem>>, vector<1x4x256xf32>
    %243 = vector.shape_cast %242 : vector<1x4x256xf32> to vector<4x256xf32>
    %244 = arith.mulf %241, %243 : vector<4x256xf32>
    %245 = arith.addf %240, %244 : vector<4x256xf32>
    %c224_i32 = arith.constant 224 : i32
    %246 = tpu.dynamic_rotate %55 by %c224_i32 dim 1 : vector<4x256xf32>, i32 -> vector<4x256xf32>
    %c38 = arith.constant 38 : index
    %c0_99 = arith.constant 0 : index
    %c0_100 = arith.constant 0 : index
    %247 = vector.load %arg4[%c38, %c0_99, %c0_100] : memref<49x4x256xf32, #tpu.memory_space<vmem>>, vector<1x4x256xf32>
    %248 = vector.shape_cast %247 : vector<1x4x256xf32> to vector<4x256xf32>
    %249 = arith.mulf %246, %248 : vector<4x256xf32>
    %250 = arith.addf %245, %249 : vector<4x256xf32>
    %c223_i32 = arith.constant 223 : i32
    %251 = tpu.dynamic_rotate %55 by %c223_i32 dim 1 : vector<4x256xf32>, i32 -> vector<4x256xf32>
    %c39 = arith.constant 39 : index
    %c0_101 = arith.constant 0 : index
    %c0_102 = arith.constant 0 : index
    %252 = vector.load %arg4[%c39, %c0_101, %c0_102] : memref<49x4x256xf32, #tpu.memory_space<vmem>>, vector<1x4x256xf32>
    %253 = vector.shape_cast %252 : vector<1x4x256xf32> to vector<4x256xf32>
    %254 = arith.mulf %251, %253 : vector<4x256xf32>
    %255 = arith.addf %250, %254 : vector<4x256xf32>
    %c222_i32 = arith.constant 222 : i32
    %256 = tpu.dynamic_rotate %55 by %c222_i32 dim 1 : vector<4x256xf32>, i32 -> vector<4x256xf32>
    %c40 = arith.constant 40 : index
    %c0_103 = arith.constant 0 : index
    %c0_104 = arith.constant 0 : index
    %257 = vector.load %arg4[%c40, %c0_103, %c0_104] : memref<49x4x256xf32, #tpu.memory_space<vmem>>, vector<1x4x256xf32>
    %258 = vector.shape_cast %257 : vector<1x4x256xf32> to vector<4x256xf32>
    %259 = arith.mulf %256, %258 : vector<4x256xf32>
    %260 = arith.addf %255, %259 : vector<4x256xf32>
    %c221_i32 = arith.constant 221 : i32
    %261 = tpu.dynamic_rotate %55 by %c221_i32 dim 1 : vector<4x256xf32>, i32 -> vector<4x256xf32>
    %c41 = arith.constant 41 : index
    %c0_105 = arith.constant 0 : index
    %c0_106 = arith.constant 0 : index
    %262 = vector.load %arg4[%c41, %c0_105, %c0_106] : memref<49x4x256xf32, #tpu.memory_space<vmem>>, vector<1x4x256xf32>
    %263 = vector.shape_cast %262 : vector<1x4x256xf32> to vector<4x256xf32>
    %264 = arith.mulf %261, %263 : vector<4x256xf32>
    %265 = arith.addf %260, %264 : vector<4x256xf32>
    %c211_i32 = arith.constant 211 : i32
    %266 = tpu.dynamic_rotate %55 by %c211_i32 dim 1 : vector<4x256xf32>, i32 -> vector<4x256xf32>
    %c42 = arith.constant 42 : index
    %c0_107 = arith.constant 0 : index
    %c0_108 = arith.constant 0 : index
    %267 = vector.load %arg4[%c42, %c0_107, %c0_108] : memref<49x4x256xf32, #tpu.memory_space<vmem>>, vector<1x4x256xf32>
    %268 = vector.shape_cast %267 : vector<1x4x256xf32> to vector<4x256xf32>
    %269 = arith.mulf %266, %268 : vector<4x256xf32>
    %270 = arith.addf %265, %269 : vector<4x256xf32>
    %c210_i32 = arith.constant 210 : i32
    %271 = tpu.dynamic_rotate %55 by %c210_i32 dim 1 : vector<4x256xf32>, i32 -> vector<4x256xf32>
    %c43 = arith.constant 43 : index
    %c0_109 = arith.constant 0 : index
    %c0_110 = arith.constant 0 : index
    %272 = vector.load %arg4[%c43, %c0_109, %c0_110] : memref<49x4x256xf32, #tpu.memory_space<vmem>>, vector<1x4x256xf32>
    %273 = vector.shape_cast %272 : vector<1x4x256xf32> to vector<4x256xf32>
    %274 = arith.mulf %271, %273 : vector<4x256xf32>
    %275 = arith.addf %270, %274 : vector<4x256xf32>
    %c209_i32 = arith.constant 209 : i32
    %276 = tpu.dynamic_rotate %55 by %c209_i32 dim 1 : vector<4x256xf32>, i32 -> vector<4x256xf32>
    %c44 = arith.constant 44 : index
    %c0_111 = arith.constant 0 : index
    %c0_112 = arith.constant 0 : index
    %277 = vector.load %arg4[%c44, %c0_111, %c0_112] : memref<49x4x256xf32, #tpu.memory_space<vmem>>, vector<1x4x256xf32>
    %278 = vector.shape_cast %277 : vector<1x4x256xf32> to vector<4x256xf32>
    %279 = arith.mulf %276, %278 : vector<4x256xf32>
    %280 = arith.addf %275, %279 : vector<4x256xf32>
    %c208_i32 = arith.constant 208 : i32
    %281 = tpu.dynamic_rotate %55 by %c208_i32 dim 1 : vector<4x256xf32>, i32 -> vector<4x256xf32>
    %c45 = arith.constant 45 : index
    %c0_113 = arith.constant 0 : index
    %c0_114 = arith.constant 0 : index
    %282 = vector.load %arg4[%c45, %c0_113, %c0_114] : memref<49x4x256xf32, #tpu.memory_space<vmem>>, vector<1x4x256xf32>
    %283 = vector.shape_cast %282 : vector<1x4x256xf32> to vector<4x256xf32>
    %284 = arith.mulf %281, %283 : vector<4x256xf32>
    %285 = arith.addf %280, %284 : vector<4x256xf32>
    %c207_i32 = arith.constant 207 : i32
    %286 = tpu.dynamic_rotate %55 by %c207_i32 dim 1 : vector<4x256xf32>, i32 -> vector<4x256xf32>
    %c46 = arith.constant 46 : index
    %c0_115 = arith.constant 0 : index
    %c0_116 = arith.constant 0 : index
    %287 = vector.load %arg4[%c46, %c0_115, %c0_116] : memref<49x4x256xf32, #tpu.memory_space<vmem>>, vector<1x4x256xf32>
    %288 = vector.shape_cast %287 : vector<1x4x256xf32> to vector<4x256xf32>
    %289 = arith.mulf %286, %288 : vector<4x256xf32>
    %290 = arith.addf %285, %289 : vector<4x256xf32>
    %c206_i32 = arith.constant 206 : i32
    %291 = tpu.dynamic_rotate %55 by %c206_i32 dim 1 : vector<4x256xf32>, i32 -> vector<4x256xf32>
    %c47 = arith.constant 47 : index
    %c0_117 = arith.constant 0 : index
    %c0_118 = arith.constant 0 : index
    %292 = vector.load %arg4[%c47, %c0_117, %c0_118] : memref<49x4x256xf32, #tpu.memory_space<vmem>>, vector<1x4x256xf32>
    %293 = vector.shape_cast %292 : vector<1x4x256xf32> to vector<4x256xf32>
    %294 = arith.mulf %291, %293 : vector<4x256xf32>
    %295 = arith.addf %290, %294 : vector<4x256xf32>
    %c205_i32 = arith.constant 205 : i32
    %296 = tpu.dynamic_rotate %55 by %c205_i32 dim 1 : vector<4x256xf32>, i32 -> vector<4x256xf32>
    %c48 = arith.constant 48 : index
    %c0_119 = arith.constant 0 : index
    %c0_120 = arith.constant 0 : index
    %297 = vector.load %arg4[%c48, %c0_119, %c0_120] : memref<49x4x256xf32, #tpu.memory_space<vmem>>, vector<1x4x256xf32>
    %298 = vector.shape_cast %297 : vector<1x4x256xf32> to vector<4x256xf32>
    %299 = arith.mulf %296, %298 : vector<4x256xf32>
    %300 = arith.addf %295, %299 : vector<4x256xf32>
    %301 = vector.extract_strided_slice %300 {offsets = [0, 0], sizes = [2, 256], strides = [1, 1]} : vector<4x256xf32> to vector<2x256xf32>
    %302 = vector.extract_strided_slice %300 {offsets = [2, 0], sizes = [2, 256], strides = [1, 1]} : vector<4x256xf32> to vector<2x256xf32>
    %303 = arith.addf %301, %302 : vector<2x256xf32>
    %304 = arith.negf %303 : vector<2x256xf32>
    %305 = math.exp %304 : vector<2x256xf32>
    %cst_121 = arith.constant 1.000000e+00 : f32
    %306 = vector.broadcast %cst_121 : f32 to vector<2x256xf32>
    %307 = arith.addf %306, %305 : vector<2x256xf32>
    %308 = arith.divf %306, %307 : vector<2x256xf32>
    %309 = vector.shape_cast %308 : vector<2x256xf32> to vector<2x1x256xf32>
    %310 = vector.broadcast %309 : vector<2x1x256xf32> to vector<2x32x256xf32>
    %311 = arith.mulf %50, %310 : vector<2x32x256xf32>
    %c0_122 = arith.constant 0 : index
    %c0_123 = arith.constant 0 : index
    %c0_124 = arith.constant 0 : index
    %312 = vector.load %arg5[%c0_122, %c0_123, %c0_124] : memref<2x32x256xf32, #tpu.memory_space<vmem>>, vector<2x32x256xf32>
    tpu.vector_store %arg5[%c0_122, %c0_123, %c0_124], %311 {strides = array<i32>} : memref<2x32x256xf32, #tpu.memory_space<vmem>>, vector<2x32x256xf32>,
    return
  }
  func.func @transform_0(%arg0: i32) -> (i32, i32, i32) {
    %c0_i32 = arith.constant 0 : i32
    %c0_i32_0 = arith.constant 0 : i32
    %c0_i32_1 = arith.constant 0 : i32
    return %arg0, %c0_i32, %c0_i32_0 : i32, i32, i32
  }
  func.func @transform_1(%arg0: i32) -> (i32, i32) {
    %c0_i32 = arith.constant 0 : i32
    %c0_i32_0 = arith.constant 0 : i32
    %c0_i32_1 = arith.constant 0 : i32
    return %c0_i32, %c0_i32_0 : i32, i32
  }
  func.func @transform_2(%arg0: i32) -> (i32, i32) {
    %c0_i32 = arith.constant 0 : i32
    %c0_i32_0 = arith.constant 0 : i32
    %c0_i32_1 = arith.constant 0 : i32
    return %c0_i32, %c0_i32_0 : i32, i32
  }
  func.func @transform_3(%arg0: i32) -> (i32, i32, i32) {
    %c0_i32 = arith.constant 0 : i32
    %c0_i32_0 = arith.constant 0 : i32
    %c0_i32_1 = arith.constant 0 : i32
    %c0_i32_2 = arith.constant 0 : i32
    return %c0_i32, %c0_i32_0, %c0_i32_1 : i32, i32, i32
  }
  func.func @transform_4(%arg0: i32) -> (i32, i32, i32) {
    %c0_i32 = arith.constant 0 : i32
    %c0_i32_0 = arith.constant 0 : i32
    %c0_i32_1 = arith.constant 0 : i32
    return %arg0, %c0_i32, %c0_i32_0 : i32, i32, i32
  }
}

</mosaic_0001>

<bundles_post_ra>
// kernel: cbam_forward.1
= control target key start
LH: loop header
LB: loop body
LE: loop exit
PB: predicated region body
PF: predicated region fallthrough
CT: control target
= control target key end

     0   :  { %s1627_s22 = smov 127   ;;  %v1628_v40 = vmov 0   ;;  %vm114_vm0 = vcmask 7168   ;;  %vm532_vm1 = vcmask 1041409   ;;  %vm541_vm2 = vcmask 1043459   ;;  %s1630_s10 = smov 50   ;;  %s2683_s0 = inlined_call_operand.vmem [shape: f32[2,32,256], index: 0, kind: input, shape index: {}]   ;;  %s2684_s1 = inlined_call_operand.vmem [shape: f32[32,2], index: 1, kind: input, shape index: {}]   ;;  %s2685_s2 = inlined_call_operand.vmem [shape: f32[32,2], index: 2, kind: input, shape index: {}]   ;;  %s2686_s3 = inlined_call_operand.vmem [shape: f32[49,4,256], index: 3, kind: input, shape index: {}]   ;;  %s2687_s4 = inlined_call_operand.vmem [shape: f32[2,32,256], index: 4, kind: output, shape index: {}]  }
   0x1   :  { %v1705_v0 = vld [vmem:[%s2683_s0 + $0x40] sm:$0xff]  ;;  %v1710_v1 = vld [vmem:[%s2683_s0 + $0x48] sm:$0xff]  ;;  %v1727_v5 = vld [vmem:[%s2683_s0 + $0x50] sm:$0xff]  ;;  %1537 = vset.pattern.permute.xlu1 %v1628_v40  ;;  %1536 = vset.pattern.permute.xlu0 %v1628_v40  ;;  %vm546_vm3 = vcmask 1041408   ;;  %s1631_s11 = smov 49   ;;  %s1632_s12 = smov 48  }
   0x2   :  { %v1715_v2 = vld [vmem:[%s2683_s0] sm:$0xff]  ;;  %v45_v3 = vadd.f32 %v1710_v1, %v1705_v0  ;;  %v1722_v4 = vld [vmem:[%s2683_s0 + $0x8] sm:$0xff]  ;;  %v1732_v6 = vld [vmem:[%s2683_s0 + $0x58] sm:$0xff]  ;;  %v78_v21 = vmax.f32 %v1705_v0, %v1710_v1  ;;  %s1633_s13 = smov 47   ;;  %s1634_s14 = smov 46  }
   0x3   :  { %v33_v7 = vadd.f32 %v1722_v4, %v1715_v2  ;;  %v1739_v8 = vld [vmem:[%s2683_s0 + $0x10] sm:$0xff]  ;;  %v1744_v9 = vld [vmem:[%s2683_s0 + $0x18] sm:$0xff]  ;;  %v48_v10 = vadd.f32 %v1732_v6, %v1727_v5  ;;  %v1753_v12 = vld [vmem:[%s2683_s0 + $0x60] sm:$0xff]  ;;  %v66_v19 = vmax.f32 %v1715_v2, %v1722_v4  ;;  %v81_v20 = vmax.f32 %v1727_v5, %v1732_v6  ;;  %s1635_s15 = smov 45   ;;  %s1636_s16 = smov 35  }
   0x4   :  { %46 = vadd.xlane.f32.xlu1 %v45_v3  ;;  %v36_v11 = vadd.f32 %v1744_v9, %v1739_v8  ;;  %v1758_v13 = vld [vmem:[%s2683_s0 + $0x68] sm:$0xff]  ;;  %v1763_v14 = vld [vmem:[%s2683_s0 + $0x20] sm:$0xff]  ;;  %v69_v18 = vmax.f32 %v1739_v8, %v1744_v9  ;;  %v1785_v22 = vld [vmem:[%s2683_s0 + $0x70] sm:$0xff]  ;;  %s1637_s17 = smov 34   ;;  %s1638_s18 = smov 33  }
   0x5   :  { %34 = vadd.xlane.f32.xlu0 %v33_v7  ;;  %v1768_v15 = vld [vmem:[%s2683_s0 + $0x28] sm:$0xff]  ;;  %v51_v16 = vadd.f32 %v1758_v13, %v1753_v12  ;;  %2699 = vst [vmem:[#allocation2_spill] sm:$0xff] %v1785_v22  ;;  %v1790_v23 = vld [vmem:[%s2683_s0 + $0x78] sm:$0xff]  ;;  %v1795_v24 = vld [vmem:[%s2683_s0 + $0x30] sm:$0xff]  ;;  %v84_v28 = vmax.f32 %v1753_v12, %v1758_v13  ;;  %s1639_s19 = smov 32   ;;  %s1640_s20 = smov 31  }
   0x6   :  { %v39_v17 = vadd.f32 %v1768_v15, %v1763_v14  ;;  %2700 = vst [vmem:[#allocation3_spill] sm:$0xff] %v1790_v23  ;;  %v1800_v25 = vld [vmem:[%s2683_s0 + $0x38] sm:$0xff]  ;;  %v54_v26 = vadd.f32 %v1790_v23, %v1785_v22  ;;  %v72_v29 = vmax.f32 %v1763_v14, %v1768_v15  ;;  %v87_v30 = vmax.f32 %v1785_v22, %v1790_v23  ;;  %v91_v32 = vld [vmem:[%s2684_s1 + $0x8] sm:$0xff]  ;;  %v1821_v33 = vld [vmem:[%s2684_s1 + $0x10] sm:$0xff]  ;;  %s1641_s0 = smov 30   ;;  %s1642_s21 = smov 29  }
   0x7   :  { %v42_v27 = vadd.f32 %v1800_v25, %v1795_v24  ;;  %v75_v31 = vmax.f32 %v1795_v24, %v1800_v25  ;;  %v90_v34 = vld [vmem:[%s2684_s1] sm:$0xff]  ;;  %v1831_v35 = vld [vmem:[%s2684_s1 + $0x18] sm:$0xff]  ;;  %v1844_v37 = vld [vmem:[%s2685_s2 + $0x8] sm:$0xff]  ;;  %s1643_s23 = smov 19   ;;  %s1644_s24 = smov 18  }
   0x8   :  { %49 = vadd.xlane.f32.xlu1 %v48_v10  ;;  %v1837_v36 = vld [vmem:[%s2685_s2] sm:$0xff]  ;;  %v1851_v38 = vld [vmem:[%s2685_s2 + $0x10] sm:$0xff]  ;;  %v1858_v39 = vld [vmem:[%s2685_s2 + $0x18] sm:$0xff]  ;;  %s1629_s2 = smov 51   ;;  %s1645_s25 = smov 17  }
   0x9   :  { %37 = vadd.xlane.f32.xlu0 %v36_v11  ;;  %s1646_s26 = smov 16   ;;  %s1647_s27 = smov 15  }
   0xa   :  { %s1648_s28 = smov 14   ;;  %s1649_s29 = smov 13  }
   0xb   :  { %s1650_s30 = smov 3   ;;  %s1651_s5 = smov 2  }
   0xc   :  { %52 = vadd.xlane.f32.xlu1 %v51_v16  ;;  %s1652_s6 = smov 1   ;;  %s1653_s1 = smov 126  }
   0xd   :  { %40 = vadd.xlane.f32.xlu0 %v39_v17  ;;  %s1654_s7 = smov 125   ;;  %s1655_s8 = smov 115  }
  0x10   :  { %70 = vmax.xlane.f32.xlu1 %v69_v18 }
  0x11   :  { %67 = vmax.xlane.f32.xlu0 %v66_v19 }
  0x14   :  { %82 = vmax.xlane.f32.xlu1 %v81_v20 }
  0x15   :  { %79 = vmax.xlane.f32.xlu0 %v78_v21 }
  0x18   :  { %55 = vadd.xlane.f32.xlu1 %v54_v26 }
  0x19   :  { %43 = vadd.xlane.f32.xlu0 %v42_v27 }
  0x1c   :  { %85 = vmax.xlane.f32.xlu1 %v84_v28 }
  0x1d   :  { %73 = vmax.xlane.f32.xlu0 %v72_v29 }
  0x20   :  { %88 = vmax.xlane.f32.xlu1 %v87_v30 }
  0x21   :  { %76 = vmax.xlane.f32.xlu0 %v75_v31 }
  0x31   :  { %209 = vrot.lane.b32.xlu1 %v91_v32, %s1627_s22 }
  0x35   :  { %211 = vrot.lane.b32.xlu1 %v1821_v33, %s1627_s22 }
  0x37   :  { %207 = vrot.lane.b32.xlu0 %v90_v34, %s1627_s22 }
  0x39   :  { %213 = vrot.lane.b32.xlu1 %v1831_v35, %s1627_s22 }
  0x3b   :  { %295 = vrot.lane.b32.xlu0 %v1837_v36, %s1627_s22 }
  0x3d   :  { %297 = vrot.lane.b32.xlu1 %v1844_v37, %s1627_s22 }
  0x3f   :  { %299 = vrot.lane.b32.xlu0 %v1851_v38, %s1627_s22 }
  0x41   :  { %301 = vrot.lane.b32.xlu1 %v1858_v39, %s1627_s22 }
  0x8d   :  { %v47_v41 = vpop.xlane.xlu1 %46 }
  0x8e   :  { %v35_v42 = vpop.xlane.xlu0 %34  ;;  %v1870_v50 = vmul.f32 0.00390625, %v47_v41 }
  0x8f   :  { %v1864_v47 = vmul.f32 0.00390625, %v35_v42 }
  0x90   :  { %v102_v58 = vmul.f32 %v90_v34, %v1870_v50 }
  0x91   :  { %v50_v43 = vpop.xlane.xlu1 %49  ;;  %v98_v55 = vmul.f32 %v90_v34, %v1864_v47 }
  0x92   :  { %v38_v44 = vpop.xlane.xlu0 %37  ;;  %v1866_v48 = vmul.f32 0.00390625, %v50_v43  ;;  %v128_v10 = vsel %vm114_vm0, %v102_v58, 0.0 }
  0x93   :  { %v1868_v49 = vmul.f32 0.00390625, %v38_v44  ;;  %v115_v63 = vsel %vm114_vm0, %v98_v55, 0.0 }
  0x94   :  { %v103_v56 = vmul.f32 %v91_v32, %v1866_v48 }
  0x95   :  { %v53_v45 = vpop.xlane.xlu1 %52  ;;  %v99_v57 = vmul.f32 %v91_v32, %v1868_v49 }
  0x96   :  { %v41_v46 = vpop.xlane.xlu0 %40  ;;  %v1872_v51 = vmul.f32 0.00390625, %v53_v45  ;;  %v129_v3 = vsel %vm114_vm0, %v103_v56, 0.0 }
  0x97   :  { %v1876_v53 = vmul.f32 0.00390625, %v41_v46  ;;  %v116_v7 = vsel %vm114_vm0, %v99_v57, 0.0  ;;  %v130_v27 = vadd.f32 %v129_v3, %v128_v10 }
  0x98   :  { %v104_v59 = vmul.f32 %v1821_v33, %v1872_v51  ;;  %v117_v28 = vadd.f32 %v116_v7, %v115_v63 }
  0x99   :  { %v1874_v52 = vpop.xlane.xlu1 %70  ;;  %v100_v61 = vmul.f32 %v1821_v33, %v1876_v53 }
  0x9a   :  { %v1878_v54 = vpop.xlane.xlu0 %67  ;;  %v131_v11 = vsel %vm114_vm0, %v104_v59, 0.0  ;;  %v107_v16 = vmul.f32 %v91_v32, %v1874_v52 }
  0x9b   :  { %v118_v18 = vsel %vm114_vm0, %v100_v61, 0.0  ;;  %v106_v29 = vmul.f32 %v90_v34, %v1878_v54  ;;  %v132_v40 = vadd.f32 %v131_v11, %v130_v27 }
  0x9c   :  { %v119_v41 = vadd.f32 %v118_v18, %v117_v28  ;;  %v142_v42 = vsel %vm114_vm0, %v107_v16, 0.0 }
  0x9d   :  { %v1886_v60 = vpop.xlane.xlu1 %82  ;;  %v141_v56 = vsel %vm114_vm0, %v106_v29, 0.0 }
  0x9e   :  { %v1890_v62 = vpop.xlane.xlu0 %79  ;;  %v111_v19 = vmul.f32 %v91_v32, %v1886_v60  ;;  %v143_v16 = vadd.f32 %v142_v42, %v141_v56 }
  0x9f   :  { %v110_v20 = vmul.f32 %v90_v34, %v1890_v62 }
  0xa0   :  { %v155_v44 = vsel %vm114_vm0, %v111_v19, 0.0 }
  0xa1   :  { %v56_v17 = vpop.xlane.xlu1 %55  ;;  %v154_v45 = vsel %vm114_vm0, %v110_v20, 0.0 }
  0xa2   :  { %v1901_v21 = vmul.f32 0.00390625, %v56_v17  ;;  %v44_v26 = vpop.xlane.xlu0 %43  ;;  %v156_v3 = vadd.f32 %v155_v44, %v154_v45 }
  0xa3   :  { %v1904_v30 = vmul.f32 0.00390625, %v44_v26 }
  0xa4   :  { %v105_v31 = vmul.f32 %v1831_v35, %v1901_v21 }
  0xa5   :  { %v101_v32 = vmul.f32 %v1831_v35, %v1904_v30  ;;  %v1911_v43 = vpop.xlane.xlu1 %85 }
  0xa6   :  { %v133_v34 = vsel %vm114_vm0, %v105_v31, 0.0  ;;  %v112_v46 = vmul.f32 %v1821_v33, %v1911_v43  ;;  %v74_v55 = vpop.xlane.xlu0 %73 }
  0xa7   :  { %v134_v57 = vadd.f32 %v133_v34, %v132_v40  ;;  %v120_v58 = vsel %vm114_vm0, %v101_v32, 0.0  ;;  %v108_v59 = vmul.f32 %v1821_v33, %v74_v55 }
  0xa8   :  { %v121_v61 = vadd.f32 %v120_v58, %v119_v41  ;;  %v157_v63 = vsel %vm114_vm0, %v112_v46, 0.0 }
  0xa9   :  { %v135_v7 = vrot.slane %v134_v57, 4  ;;  %v144_v10 = vsel %vm114_vm0, %v108_v59, 0.0  ;;  %v1923_v11 = vpop.xlane.xlu1 %88  ;;  %v158_v26 = vadd.f32 %v157_v63, %v156_v3 }
  0xaa   :  { %v122_v17 = vrot.slane %v121_v61, 4  ;;  %v113_v18 = vmul.f32 %v1831_v35, %v1923_v11  ;;  %v1927_v19 = vpop.xlane.xlu0 %76  ;;  %v145_v28 = vadd.f32 %v144_v10, %v143_v16 }
  0xab   :  { %v136_v20 = vadd.f32 %v135_v7, %v134_v57  ;;  %v109_v33 = vmul.f32 %v1831_v35, %v1927_v19 }
  0xac   :  { %v123_v27 = vadd.f32 %v122_v17, %v121_v61  ;;  %v159_v29 = vsel %vm114_vm0, %v113_v18, 0.0 }
  0xad   :  { %v137_v31 = vrot.slane %v136_v20, 2  ;;  %v160_v40 = vadd.f32 %v159_v29, %v158_v26  ;;  %v146_v41 = vsel %vm114_vm0, %v109_v33, 0.0  ;;  %v210_v42 = vpop.permute.xlu1 %209 }
  0xae   :  { %v124_v32 = vrot.slane %v123_v27, 2  ;;  %v147_v44 = vadd.f32 %v146_v41, %v145_v28  ;;  %v208_v46 = vpop.permute.xlu0 %207  ;;  %v220_v57 = vmul.f32 %v210_v42, %v1868_v49  ;;  %v224_v35 = vmul.f32 %v210_v42, %v1866_v48 }
  0xaf   :  { %v138_v45 = vadd.f32 %v137_v31, %v136_v20  ;;  %v161_v34 = vrot.slane %v160_v40, 4  ;;  %v228_v59 = vmul.f32 %v210_v42, %v1874_v52  ;;  %v232_v61 = vmul.f32 %v210_v42, %v1886_v60 }
  0xb0   :  { %v148_v56 = vrot.slane %v147_v44, 4  ;;  %v125_v7 = vadd.f32 %v124_v32, %v123_v27  ;;  %v219_v16 = vmul.f32 %v208_v46, %v1864_v47  ;;  %v223_v18 = vmul.f32 %v208_v46, %v1870_v50 }
  0xb1   :  { %v162_v58 = vadd.f32 %v161_v34, %v160_v40  ;;  %v212_v63 = vpop.permute.xlu1 %211  ;;  %v139_v3 = vrot.slane %v138_v45, 1  ;;  %v227_v20 = vmul.f32 %v208_v46, %v1878_v54  ;;  %v231_v49 = vmul.f32 %v208_v46, %v1890_v62 }
  0xb2   :  { %v149_v10 = vadd.f32 %v148_v56, %v147_v44  ;;  %v236_v48 = vsel %vm114_vm0, %v220_v57, 0.0  ;;  %v249_v52 = vsel %vm114_vm0, %v224_v35, 0.0  ;;  %v262_v60 = vsel %vm114_vm0, %v228_v59, 0.0 }
  0xb3   :  { %v163_v17 = vrot.slane %v162_v58, 2  ;;  %v275_v33 = vsel %vm114_vm0, %v232_v61, 0.0  ;;  %v140_v27 = vadd.f32 %v139_v3, %v138_v45  ;;  %v126_v28 = vrot.slane %v125_v7, 1 }
  0xb4   :  { %v150_v26 = vrot.slane %v149_v10, 2  ;;  %v235_v47 = vsel %vm114_vm0, %v219_v16, 0.0  ;;  %v248_v54 = vsel %vm114_vm0, %v223_v18, 0.0  ;;  %v261_v40 = vsel %vm114_vm0, %v227_v20, 0.0 }
  0xb5   :  { %v164_v29 = vadd.f32 %v163_v17, %v162_v58  ;;  %v214_v31 = vpop.permute.xlu1 %213  ;;  %v221_v62 = vmul.f32 %v212_v63, %v1876_v53  ;;  %v274_v41 = vsel %vm114_vm0, %v231_v49, 0.0  ;;  %v225_v42 = vmul.f32 %v212_v63, %v1872_v51 }
  0xb6   :  { %v151_v50 = vadd.f32 %v150_v26, %v149_v10  ;;  %v229_v32 = vmul.f32 %v212_v63, %v74_v55  ;;  %v233_v44 = vmul.f32 %v212_v63, %v1911_v43  ;;  %v237_v45 = vadd.f32 %v236_v48, %v235_v47 }
  0xb7   :  { %v238_v34 = vsel %vm114_vm0, %v221_v62, 0.0  ;;  %v222_v46 = vmul.f32 %v214_v31, %v1904_v30  ;;  %v226_v56 = vmul.f32 %v214_v31, %v1901_v21  ;;  %v165_v57 = vrot.slane %v164_v29, 1 }
  0xb8   :  { %v250_v58 = vadd.f32 %v249_v52, %v248_v54  ;;  %v251_v35 = vsel %vm114_vm0, %v225_v42, 0.0  ;;  %v264_v53 = vsel %vm114_vm0, %v229_v32, 0.0  ;;  %v152_v59 = vrot.slane %v151_v50, 1 }
  0xb9   :  { %v263_v61 = vadd.f32 %v262_v60, %v261_v40  ;;  %v276_v3 = vadd.f32 %v275_v33, %v274_v41  ;;  %v277_v51 = vsel %vm114_vm0, %v233_v44, 0.0  ;;  %v239_v55 = vadd.f32 %v238_v34, %v237_v45 }
  0xba   :  { %v252_v43 = vadd.f32 %v251_v35, %v250_v58  ;;  %v230_v63 = vmul.f32 %v214_v31, %v1927_v19  ;;  %v234_v10 = vmul.f32 %v214_v31, %v1923_v11  ;;  %v240_v21 = vsel %vm114_vm0, %v222_v46, 0.0 }
  0xbb   :  { %v265_v30 = vadd.f32 %v264_v53, %v263_v61  ;;  %v278_v16 = vadd.f32 %v277_v51, %v276_v3  ;;  %v253_v17 = vsel %vm114_vm0, %v226_v56, 0.0  ;;  %v241_v18 = vadd.f32 %v240_v21, %v239_v55 }
  0xbc   :  { %v254_v20 = vadd.f32 %v253_v17, %v252_v43  ;;  %v266_v26 = vsel %vm114_vm0, %v230_v63, 0.0  ;;  %v279_v49 = vsel %vm114_vm0, %v234_v10, 0.0  ;;  %v127_v48 = vadd.f32 %v126_v28, %v125_v7  ;;  %v298_v63 = vpop.permute.xlu1 %297 }
  0xbd   :  { %v153_v52 = vadd.f32 %v152_v59, %v151_v50  ;;  %v267_v60 = vadd.f32 %v266_v26, %v265_v30  ;;  %v280_v33 = vadd.f32 %v279_v49, %v278_v16  ;;  %v166_v47 = vadd.f32 %v165_v57, %v164_v29 }
  0xbe   :  { %v242_v19 = vrot.slane %v241_v18, 4  ;;  %v255_v54 = vrot.slane %v254_v20, 4  ;;  %v168_v40 = vmax.f32 %v140_v27, 0.0  ;;  %v167_v42 = vmax.f32 %v127_v48, 0.0 }
  0xbf   :  { %v268_v11 = vrot.slane %v267_v60, 4  ;;  %v281_v31 = vrot.slane %v280_v33, 4  ;;  %v169_v32 = vmax.f32 %v153_v52, 0.0  ;;  %v1964_v34 = vmax.f32 %v166_v47, 0.0 }
  0xc0   :  { %v243_v62 = vadd.f32 %v242_v19, %v241_v18  ;;  %v256_v41 = vadd.f32 %v255_v54, %v254_v20  ;;  %v176_v29 = vmul.f32 %v168_v40, %v1844_v37  ;;  %v172_v27 = vmul.f32 %v167_v42, %v1844_v37 }
  0xc1   :  { %v269_v44 = vadd.f32 %v268_v11, %v267_v60  ;;  %v282_v45 = vadd.f32 %v281_v31, %v280_v33  ;;  %v180_v53 = vmul.f32 %v169_v32, %v1844_v37  ;;  %v184_v3 = vmul.f32 %v1964_v34, %v1844_v37  ;;  %v296_v60 = vpop.permute.xlu0 %295 }
  0xc2   :  { %v244_v46 = vrot.slane %v243_v62, 2  ;;  %v257_v56 = vrot.slane %v256_v41, 2  ;;  %v171_v51 = vmul.f32 %v167_v42, %v1837_v36  ;;  %v175_v10 = vmul.f32 %v168_v40, %v1837_v36 }
  0xc3   :  { %v270_v7 = vrot.slane %v269_v44, 2  ;;  %v283_v28 = vrot.slane %v282_v45, 2  ;;  %v179_v30 = vmul.f32 %v169_v32, %v1837_v36  ;;  %v183_v17 = vmul.f32 %v1964_v34, %v1837_v36 }
  0xc4   :  { %v245_v50 = vadd.f32 %v244_v46, %v243_v62  ;;  %v258_v58 = vadd.f32 %v257_v56, %v256_v41  ;;  %v178_v18 = vmul.f32 %v168_v40, %v1858_v39  ;;  %v174_v37 = vmul.f32 %v167_v42, %v1858_v39 }
  0xc5   :  { %v271_v57 = vadd.f32 %v270_v7, %v269_v44  ;;  %v284_v35 = vadd.f32 %v283_v28, %v282_v45  ;;  %v182_v49 = vmul.f32 %v169_v32, %v1858_v39  ;;  %v186_v33 = vmul.f32 %v1964_v34, %v1858_v39  ;;  %v302_v28 = vpop.permute.xlu1 %301 }
  0xc6   :  { %v246_v59 = vrot.slane %v245_v50, 1  ;;  %v259_v61 = vrot.slane %v258_v58, 1  ;;  %v173_v47 = vmul.f32 %v167_v42, %v1851_v38  ;;  %v177_v36 = vmul.f32 %v168_v40, %v1851_v38 }
  0xc7   :  { %v272_v55 = vrot.slane %v271_v57, 1  ;;  %v285_v43 = vrot.slane %v284_v35, 1  ;;  %v181_v11 = vmul.f32 %v169_v32, %v1851_v38 }
  0xc8   :  { %v247_v16 = vadd.f32 %v246_v59, %v245_v50  ;;  %v260_v21 = vadd.f32 %v259_v61, %v258_v58 }
  0xc9   :  { %v273_v20 = vadd.f32 %v272_v55, %v271_v57  ;;  %v286_v26 = vadd.f32 %v285_v43, %v284_v35 }
  0xca   :  { %v287_v48 = vmax.f32 %v247_v16, 0.0  ;;  %v288_v52 = vmax.f32 %v260_v21, 0.0  ;;  %v300_v16 = vpop.permute.xlu0 %299 }
  0xcb   :  { %v289_v19 = vmax.f32 %v273_v20, 0.0  ;;  %v290_v54 = vmax.f32 %v286_v26, 0.0 }
  0xcc   :  { %v308_v31 = vmul.f32 %v298_v63, %v287_v48  ;;  %v312_v62 = vmul.f32 %v298_v63, %v288_v52  ;;  %v307_v41 = vmul.f32 %v296_v60, %v287_v48  ;;  %v311_v44 = vmul.f32 %v296_v60, %v288_v52 }
  0xcd   :  { %v316_v45 = vmul.f32 %v298_v63, %v289_v19  ;;  %v320_v46 = vmul.f32 %v298_v63, %v290_v54  ;;  %v315_v56 = vmul.f32 %v296_v60, %v289_v19  ;;  %v319_v7 = vmul.f32 %v296_v60, %v290_v54 }
  0xce   :  { %v324_v50 = vadd.f32 %v308_v31, %v172_v27  ;;  %v328_v58 = vadd.f32 %v312_v62, %v176_v29  ;;  %v323_v39 = vadd.f32 %v307_v41, %v171_v51  ;;  %v327_v57 = vadd.f32 %v311_v44, %v175_v10 }
  0xcf   :  { %v332_v42 = vadd.f32 %v316_v45, %v180_v53  ;;  %v336_v35 = vadd.f32 %v320_v46, %v184_v3  ;;  %v331_v59 = vadd.f32 %v315_v56, %v179_v30  ;;  %v335_v61 = vadd.f32 %v319_v7, %v183_v17 }
  0xd0   :  { %v310_v40 = vmul.f32 %v302_v28, %v287_v48  ;;  %v314_v55 = vmul.f32 %v302_v28, %v288_v52  ;;  %v318_v32 = vmul.f32 %v302_v28, %v289_v19  ;;  %v322_v43 = vmul.f32 %v302_v28, %v290_v54 }
  0xd1   :  { %v340_v21 = vadd.f32 %v332_v42, %v324_v50  ;;  %v344_v20 = vadd.f32 %v336_v35, %v328_v58  ;;  %v339_v26 = vadd.f32 %v331_v59, %v323_v39  ;;  %v343_v63 = vadd.f32 %v335_v61, %v327_v57 }
  0xd2   :  { %v326_v23 = vadd.f32 %v310_v40, %v174_v37  ;;  %v330_v60 = vadd.f32 %v314_v55, %v178_v18  ;;  %v334_v22 = vadd.f32 %v318_v32, %v182_v49  ;;  %v338_v27 = vadd.f32 %v322_v43, %v186_v33 }
  0xd3   :  { %v1429_v29 = vmul.f32 -1.442695, %v340_v21  ;;  %v1433_v51 = vmul.f32 -1.442695, %v344_v20  ;;  %v1428_v10 = vmul.f32 -1.442695, %v339_v26  ;;  %v309_v53 = vmul.f32 %v300_v16, %v287_v48 }
  0xd4   :  { %v1432_v3 = vmul.f32 -1.442695, %v343_v63  ;;  %v342_v30 = vadd.f32 %v334_v22, %v326_v23  ;;  %v185_v17 = vmul.f32 %v1964_v34, %v1851_v38  ;;  %v313_v31 = vmul.f32 %v300_v16, %v288_v52 }
  0xd5   :  { %1587 = vpow2.f32 %v1429_v29  ;;  %v317_v62 = vmul.f32 %v300_v16, %v289_v19  ;;  %v321_v41 = vmul.f32 %v300_v16, %v290_v54  ;;  %v325_v44 = vadd.f32 %v309_v53, %v173_v47 }
  0xd6   :  { %1589 = vpow2.f32 %v1433_v51  ;;  %v329_v45 = vadd.f32 %v313_v31, %v177_v36  ;;  %v346_v18 = vadd.f32 %v338_v27, %v330_v60  ;;  %v1431_v33 = vmul.f32 -1.442695, %v342_v30 }
  0xd7   :  { %1591 = vpow2.f32 %v1428_v10  ;;  %v333_v37 = vadd.f32 %v317_v62, %v181_v11  ;;  %v337_v49 = vadd.f32 %v321_v41, %v185_v17 }
  0xd8   :  { %1593 = vpow2.f32 %v1432_v3  ;;  %v1435_v56 = vmul.f32 -1.442695, %v346_v18 }
  0xd9   :  { %v341_v46 = vadd.f32 %v333_v37, %v325_v44  ;;  %v345_v48 = vadd.f32 %v337_v49, %v329_v45  ;;  %1595 = vpow2.f32 %v1431_v33 }
  0xdb   :  { %v1430_v22 = vmul.f32 -1.442695, %v341_v46  ;;  %v1434_v23 = vmul.f32 -1.442695, %v345_v48 }
  0xdd   :  { %1597 = vpow2.f32 %v1430_v22 }
  0xde   :  { %1599 = vpow2.f32 %v1434_v23 }
  0xdf   :  { %1601 = vpow2.f32 %v1435_v56 }
  0xe2   :  { %v1588_v38 = vpop.eup %1587 }
  0xe3   :  { %v1590_v34 = vpop.eup %1589  ;;  %v372_v52 = vadd.f32 1.0, %v1588_v38  ;;  %v2707_v38 = vld [vmem:[#allocation2_spill] sm:$0xff] }
  0xe4   :  { %v1592_v47 = vpop.eup %1591  ;;  %v376_v11 = vadd.f32 1.0, %v1590_v34 }
  0xe5   :  { %v1594_v19 = vpop.eup %1593  ;;  %1603 = vrcp.f32 %v372_v52  ;;  %v371_v54 = vadd.f32 1.0, %v1592_v47  ;;  %v2709_v52 = vld [vmem:[#allocation3_spill] sm:$0xff] }
  0xe6   :  { %v375_v36 = vadd.f32 1.0, %v1594_v19  ;;  %v1596_v7 = vpop.eup %1595 }
  0xe7   :  { %1605 = vrcp.f32 %v371_v54  ;;  %v374_v42 = vadd.f32 1.0, %v1596_v7 }
  0xe8   :  { %1607 = vrcp.f32 %v375_v36 }
  0xe9   :  { %1609 = vrcp.f32 %v376_v11 }
  0xea   :  { %v1598_v28 = vpop.eup %1597 }
  0xeb   :  { %v1600_v50 = vpop.eup %1599  ;;  %v373_v58 = vadd.f32 1.0, %v1598_v28 }
  0xec   :  { %v1602_v39 = vpop.eup %1601  ;;  %v377_v57 = vadd.f32 1.0, %v1600_v50 }
  0xed   :  { %1611 = vrcp.f32 %v373_v58  ;;  %v378_v35 = vadd.f32 1.0, %v1602_v39 }
  0xee   :  { %1613 = vrcp.f32 %v377_v57 }
  0xef   :  { %1615 = vrcp.f32 %v374_v42 }
  0xf0   :  { %1617 = vrcp.f32 %v378_v35 }
  0xf2   :  { %v1604_v59 = vpop.eup %1603 }
  0xf3   :  { %402 = vperm.xlu1 %1537, %v1604_v59  }
  0xf4   :  { %v1606_v61 = vpop.eup %1605 }
  0xf5   :  { %397 = vperm.xlu0 %1536, %v1606_v61   ;;  %v1608_v40 = vpop.eup %1607 }
  0xf6   :  { %v1610_v55 = vpop.eup %1609 }
  0xf7   :  { %417 = vperm.xlu1 %1537, %v1608_v40  }
  0xf9   :  { %422 = vperm.xlu0 %1536, %v1610_v55  }
  0xfa   :  { %v1612_v32 = vpop.eup %1611 }
  0xfb   :  { %407 = vperm.xlu1 %1537, %v1612_v32   ;;  %v1614_v43 = vpop.eup %1613 }
  0xfc   :  { %v1616_v16 = vpop.eup %1615 }
  0xfd   :  { %427 = vperm.xlu0 %1536, %v1614_v43   ;;  %v1618_v21 = vpop.eup %1617 }
  0xff   :  { %412 = vperm.xlu1 %1537, %v1616_v16  }
 0x101   :  { %432 = vperm.xlu0 %1536, %v1618_v21  }
 0x16e   :  { %v403_v20 = vpop.permute.xlu1 %402 }
 0x16f   :  { %v1987_v60 = vmul.f32 %v403_v20, %v1739_v8  ;;  %v1990_v27 = vmul.f32 %v403_v20, %v1744_v9 }
 0x170   :  { %v398_v26 = vpop.permute.xlu0 %397 }
 0x171   :  { %v1993_v29 = vmul.f32 %v398_v26, %v1715_v2  ;;  %v1996_v51 = vmul.f32 %v398_v26, %v1722_v4 }
 0x172   :  { %v418_v63 = vpop.permute.xlu1 %417 }
 0x173   :  { %v1999_v53 = vmul.f32 %v418_v63, %v1705_v0  ;;  %v2002_v3 = vmul.f32 %v418_v63, %v1710_v1  ;;  %v451_v2 = vadd.f32 %v1987_v60, %v1993_v29  ;;  %v460_v4 = vadd.f32 %v1990_v27, %v1996_v51 }
 0x174   :  { %v423_v10 = vpop.permute.xlu0 %422 }
 0x175   :  { %2701 = vst [vmem:[#allocation4_spill] sm:$0xff] %v1999_v53  ;;  %2702 = vst [vmem:[#allocation5_spill] sm:$0xff] %v2002_v3  ;;  %v2005_v30 = vmul.f32 %v423_v10, %v1727_v5  ;;  %v2008_v8 = vmul.f32 %v423_v10, %v1732_v6  ;;  %v492_v5 = vmax.f32 %v1993_v29, %v1987_v60 }
 0x176   :  { %v408_v9 = vpop.permute.xlu1 %407  ;;  %v501_v6 = vmax.f32 %v1996_v51, %v1990_v27 }
 0x177   :  { %2703 = vst [vmem:[#allocation6_spill] sm:$0xff] %v2005_v30  ;;  %2704 = vst [vmem:[#allocation7_spill] sm:$0xff] %v2008_v8  ;;  %v2015_v17 = vmul.f32 %v408_v9, %v1763_v14  ;;  %v2018_v0 = vmul.f32 %v408_v9, %v1768_v15  ;;  %v469_v14 = vadd.f32 %v2005_v30, %v1999_v53 }
 0x178   :  { %v428_v1 = vpop.permute.xlu0 %427  ;;  %v478_v15 = vadd.f32 %v2008_v8, %v2002_v3  ;;  %v510_v41 = vmax.f32 %v1999_v53, %v2005_v30  ;;  %v519_v44 = vmax.f32 %v2002_v3, %v2008_v8 }
 0x179   :  { %v2025_v31 = vmul.f32 %v428_v1, %v1753_v12  ;;  %v2028_v62 = vmul.f32 %v428_v1, %v1758_v13  ;;  %v452_v18 = vadd.f32 %v451_v2, %v2015_v17  ;;  %v461_v12 = vadd.f32 %v460_v4, %v2018_v0 }
 0x17a   :  { %v413_v45 = vpop.permute.xlu1 %412  ;;  %v493_v13 = vmax.f32 %v492_v5, %v2015_v17  ;;  %v502_v37 = vmax.f32 %v501_v6, %v2018_v0 }
 0x17b   :  { %2705 = vst [vmem:[#allocation8_spill] sm:$0xff] %v2025_v31  ;;  %2706 = vst [vmem:[#allocation9_spill] sm:$0xff] %v2028_v62  ;;  %v470_v49 = vadd.f32 %v469_v14, %v2025_v31  ;;  %v479_v33 = vadd.f32 %v478_v15, %v2028_v62  ;;  %v2045_v46 = vmul.f32 %v413_v45, %v1795_v24 }
 0x17c   :  { %v2048_v48 = vmul.f32 %v413_v45, %v1800_v25  ;;  %v433_v56 = vpop.permute.xlu0 %432  ;;  %v511_v22 = vmax.f32 %v510_v41, %v2025_v31  ;;  %v520_v23 = vmax.f32 %v519_v44, %v2028_v62 }
 0x17d   :  { %v2053_v34 = vmul.f32 %v433_v56, %v2707_v38  ;;  %v2056_v47 = vmul.f32 %v433_v56, %v2709_v52  ;;  %v453_v19 = vadd.f32 %v452_v18, %v2045_v46  ;;  %v494_v24 = vmax.f32 %v493_v13, %v2045_v46 }
 0x17e   :  { %v462_v54 = vadd.f32 %v461_v12, %v2048_v48  ;;  %v503_v25 = vmax.f32 %v502_v37, %v2048_v48 }
 0x17f   :  { %2708 = vst [vmem:[#allocation2_spill] sm:$0xff] %v2053_v34  ;;  %2710 = vst [vmem:[#allocation3_spill] sm:$0xff] %v2056_v47  ;;  %v471_v36 = vadd.f32 %v470_v49, %v2053_v34  ;;  %v480_v11 = vadd.f32 %v479_v33, %v2056_v47  ;;  %v512_v7 = vmax.f32 %v511_v22, %v2053_v34  ;;  %v454_v50 = vrot.slane %v453_v19, 4 }
 0x180   :  { %v521_v28 = vmax.f32 %v520_v23, %v2056_v47  ;;  %v463_v58 = vrot.slane %v462_v54, 4  ;;  %v495_v39 = vrot.slane %v494_v24, 4  ;;  %v504_v57 = vrot.slane %v503_v25, 4 }
 0x181   :  { %v472_v42 = vrot.slane %v471_v36, 4  ;;  %v481_v35 = vrot.slane %v480_v11, 4  ;;  %v513_v59 = vrot.slane %v512_v7, 4  ;;  %v455_v40 = vadd.f32 %v454_v50, %v453_v19 }
 0x182   :  { %v522_v61 = vrot.slane %v521_v28, 4  ;;  %v464_v55 = vadd.f32 %v463_v58, %v462_v54  ;;  %v496_v32 = vmax.f32 %v494_v24, %v495_v39  ;;  %v505_v43 = vmax.f32 %v503_v25, %v504_v57 }
 0x183   :  { %v473_v16 = vadd.f32 %v472_v42, %v471_v36  ;;  %v482_v21 = vadd.f32 %v481_v35, %v480_v11  ;;  %v514_v20 = vmax.f32 %v512_v7, %v513_v59  ;;  %v456_v63 = vrot.slane %v455_v40, 2 }
 0x184   :  { %v523_v26 = vmax.f32 %v521_v28, %v522_v61  ;;  %v465_v10 = vrot.slane %v464_v55, 2  ;;  %v497_v9 = vrot.slane %v496_v32, 2  ;;  %v506_v2 = vrot.slane %v505_v43, 2 }
 0x185   :  { %v474_v4 = vrot.slane %v473_v16, 2  ;;  %v483_v1 = vrot.slane %v482_v21, 2  ;;  %v515_v5 = vrot.slane %v514_v20, 2  ;;  %v457_v14 = vadd.f32 %v456_v63, %v455_v40 }
 0x186   :  { %v524_v6 = vrot.slane %v523_v26, 2  ;;  %v466_v15 = vadd.f32 %v465_v10, %v464_v55  ;;  %v498_v41 = vmax.f32 %v496_v32, %v497_v9  ;;  %v507_v44 = vmax.f32 %v505_v43, %v506_v2 }
 0x187   :  { %v475_v45 = vadd.f32 %v474_v4, %v473_v16  ;;  %v484_v18 = vadd.f32 %v483_v1, %v482_v21  ;;  %v516_v12 = vmax.f32 %v514_v20, %v515_v5  ;;  %v458_v37 = vrot.slane %v457_v14, 1  ;;  %v558_v16 = vld [vmem:[%s2686_s3] sm:$0xff]  ;;  %v1436_v21 = vld [vmem:[%s2686_s3 + $0x8] sm:$0xff]  ;;  %v1437_v4 = vld [vmem:[%s2686_s3 + $0x10] sm:$0xff] }
 0x188   :  { %v525_v13 = vmax.f32 %v523_v26, %v524_v6  ;;  %v467_v49 = vrot.slane %v466_v15, 1  ;;  %v499_v33 = vrot.slane %v498_v41, 1  ;;  %v508_v56 = vrot.slane %v507_v44, 1 }
 0x189   :  { %v476_v22 = vrot.slane %v475_v45, 1  ;;  %v485_v23 = vrot.slane %v484_v18, 1  ;;  %v517_v38 = vrot.slane %v516_v12, 1  ;;  %v459_v19 = vadd.f32 %v458_v37, %v457_v14 }
 0x18a   :  { %v526_v52 = vrot.slane %v525_v13, 1  ;;  %v468_v54 = vadd.f32 %v467_v49, %v466_v15  ;;  %v500_v24 = vmax.f32 %v498_v41, %v499_v33  ;;  %v509_v25 = vmax.f32 %v507_v44, %v508_v56 }
 0x18b   :  { %v477_v36 = vadd.f32 %v476_v22, %v475_v45  ;;  %v486_v11 = vadd.f32 %v485_v23, %v484_v18  ;;  %v518_v7 = vmax.f32 %v516_v12, %v517_v38  ;;  %v488_v50 = vmul.f32 0.03125, %v459_v19  ;;  %v1438_v12 = vld [vmem:[%s2686_s3 + $0x18] sm:$0xff]  ;;  %v1439_v19 = vld [vmem:[%s2686_s3 + $0x20] sm:$0xff] }
 0x18c   :  { %v527_v28 = vmax.f32 %v525_v13, %v526_v52  ;;  %v489_v58 = vmul.f32 0.03125, %v468_v54  ;;  %v2690_v32 = vlaneseq  ;;  %v560_v9 = vcombine.high %v558_v16, %v558_v16 }
 0x18d   :  { %v490_v39 = vmul.f32 0.03125, %v477_v36  ;;  %v491_v57 = vmul.f32 0.03125, %v486_v11  ;;  %v542_v59 = vsel %vm541_vm2, %v518_v7, %v500_v24  ;;  %v576_v2 = vcombine.high %v1436_v21, %v1436_v21 }
 0x18e   :  { %v543_v61 = vsel %vm541_vm2, %v527_v28, %v509_v25  ;;  %v2129_v43 = vand.u32 127, %v2690_v32  ;;  %v592_v41 = vcombine.high %v1437_v4, %v1437_v4  ;;  %v608_v52 = vcombine.high %v1438_v12, %v1438_v12 }
 0x18f   :  { %v533_v42 = vsel %vm532_vm1, %v490_v39, %v488_v50  ;;  %v534_v35 = vsel %vm532_vm1, %v491_v57, %v489_v58  ;;  %v624_v58 = vcombine.high %v1439_v19, %v1439_v19  ;;  %v1440_v39 = vld [vmem:[%s2686_s3 + $0x28] sm:$0xff] }
 0x190   :  { %v2066_v40 = vsel %vm546_vm3, %v533_v42, %v542_v59  ;;  %v2068_v55 = vsel %vm546_vm3, %v534_v35, %v543_v61  ;;  %vm555_vm4 = vcmp.lt.s32.totalorder %v2129_v43, 51  ;;  %vm570_vm5 = vcmp.lt.s32.totalorder %v2129_v43, 50 }
 0x191   :  { %551 = vrot.lane.b32.xlu0 %v2068_v55, %s1629_s2  ;;  %549 = vrot.lane.b32.xlu1 %v2066_v40, %s1629_s2  ;;  %vm586_vm6 = vcmp.lt.s32.totalorder %v2129_v43, 49  ;;  %vm602_vm7 = vcmp.lt.s32.totalorder %v2129_v43, 48  ;;  %vm618_vm8 = vcmp.lt.s32.totalorder %v2129_v43, 47  ;;  %vm634_vm9 = vcmp.lt.s32.totalorder %v2129_v43, 46 }
 0x192   :  { %vm650_vm10 = vcmp.lt.s32.totalorder %v2129_v43, 45  ;;  %vm666_vm11 = vcmp.lt.s32.totalorder %v2129_v43, 35  ;;  %vm682_vm12 = vcmp.lt.s32.totalorder %v2129_v43, 34  ;;  %vm698_vm13 = vcmp.lt.s32.totalorder %v2129_v43, 33 }
 0x193   :  { %vm714_vm14 = vcmp.lt.s32.totalorder %v2129_v43, 32  ;;  %vm730_vm15 = vcmp.lt.s32.totalorder %v2129_v43, 31  ;;  %vm746_vm0 = vcmp.lt.s32.totalorder %v2129_v43, 30  ;;  %vm762_vm1 = vcmp.lt.s32.totalorder %v2129_v43, 29 }
 0x194   :  { %vm778_vm2 = vcmp.lt.s32.totalorder %v2129_v43, 19  ;;  %vm794_vm3 = vcmp.lt.s32.totalorder %v2129_v43, 18 }
 0x195   :  { %568 = vrot.lane.b32.xlu0 %v2068_v55, %s1630_s10  ;;  %566 = vrot.lane.b32.xlu1 %v2066_v40, %s1630_s10  ;;  %s1666_s10 = smov 95  }
 0x199   :  { %584 = vrot.lane.b32.xlu0 %v2068_v55, %s1631_s11  ;;  %582 = vrot.lane.b32.xlu1 %v2066_v40, %s1631_s11 }
 0x19d   :  { %600 = vrot.lane.b32.xlu0 %v2068_v55, %s1632_s12  ;;  %598 = vrot.lane.b32.xlu1 %v2066_v40, %s1632_s12  ;;  %s1657_s12 = smov 113  }
 0x1a1   :  { %616 = vrot.lane.b32.xlu0 %v2068_v55, %s1633_s13  ;;  %614 = vrot.lane.b32.xlu1 %v2066_v40, %s1633_s13  ;;  %s1667_s13 = smov 94  }
 0x1a5   :  { %632 = vrot.lane.b32.xlu0 %v2068_v55, %s1634_s14  ;;  %630 = vrot.lane.b32.xlu1 %v2066_v40, %s1634_s14 }
 0x1a9   :  { %648 = vrot.lane.b32.xlu0 %v2068_v55, %s1635_s15  ;;  %646 = vrot.lane.b32.xlu1 %v2066_v40, %s1635_s15  ;;  %s1658_s15 = smov 112  }
 0x1ad   :  { %664 = vrot.lane.b32.xlu0 %v2068_v55, %s1636_s16  ;;  %662 = vrot.lane.b32.xlu1 %v2066_v40, %s1636_s16  ;;  %s1668_s16 = smov 93  }
 0x1b1   :  { %680 = vrot.lane.b32.xlu0 %v2068_v55, %s1637_s17  ;;  %678 = vrot.lane.b32.xlu1 %v2066_v40, %s1637_s17 }
 0x1b5   :  { %696 = vrot.lane.b32.xlu0 %v2068_v55, %s1638_s18  ;;  %694 = vrot.lane.b32.xlu1 %v2066_v40, %s1638_s18  ;;  %s1659_s18 = smov 111  }
 0x1b9   :  { %712 = vrot.lane.b32.xlu0 %v2068_v55, %s1639_s19  ;;  %710 = vrot.lane.b32.xlu1 %v2066_v40, %s1639_s19  ;;  %s1669_s19 = smov 83  }
 0x1bd   :  { %728 = vrot.lane.b32.xlu0 %v2068_v55, %s1640_s20  ;;  %726 = vrot.lane.b32.xlu1 %v2066_v40, %s1640_s20 }
 0x1c1   :  { %744 = vrot.lane.b32.xlu0 %v2068_v55, %s1641_s0  ;;  %742 = vrot.lane.b32.xlu1 %v2066_v40, %s1641_s0  ;;  %s1660_s0 = smov 110  }
 0x1c5   :  { %760 = vrot.lane.b32.xlu0 %v2068_v55, %s1642_s21  ;;  %758 = vrot.lane.b32.xlu1 %v2066_v40, %s1642_s21  ;;  %s1670_s21 = smov 82  }
 0x1c9   :  { %776 = vrot.lane.b32.xlu0 %v2068_v55, %s1643_s23  ;;  %774 = vrot.lane.b32.xlu1 %v2066_v40, %s1643_s23  ;;  %s1671_s23 = smov 81  }
 0x1cd   :  { %792 = vrot.lane.b32.xlu0 %v2068_v55, %s1644_s24  ;;  %790 = vrot.lane.b32.xlu1 %v2066_v40, %s1644_s24  ;;  %s1661_s24 = smov 109  }
 0x1d1   :  { %808 = vrot.lane.b32.xlu0 %v2068_v55, %s1645_s25  ;;  %806 = vrot.lane.b32.xlu1 %v2066_v40, %s1645_s25  ;;  %s1673_s25 = smov 79  }
 0x1d5   :  { %824 = vrot.lane.b32.xlu0 %v2068_v55, %s1646_s26  ;;  %822 = vrot.lane.b32.xlu1 %v2066_v40, %s1646_s26  ;;  %s1674_s26 = smov 78  }
 0x1d9   :  { %840 = vrot.lane.b32.xlu0 %v2068_v55, %s1647_s27  ;;  %838 = vrot.lane.b32.xlu1 %v2066_v40, %s1647_s27  ;;  %s1662_s27 = smov 99  }
 0x1dd   :  { %856 = vrot.lane.b32.xlu0 %v2068_v55, %s1648_s28  ;;  %854 = vrot.lane.b32.xlu1 %v2066_v40, %s1648_s28 }
 0x1e1   :  { %872 = vrot.lane.b32.xlu0 %v2068_v55, %s1649_s29  ;;  %870 = vrot.lane.b32.xlu1 %v2066_v40, %s1649_s29 }
 0x1e5   :  { %888 = vrot.lane.b32.xlu0 %v2068_v55, %s1650_s30  ;;  %886 = vrot.lane.b32.xlu1 %v2066_v40, %s1650_s30  ;;  %s1663_s30 = smov 98  }
 0x1e9   :  { %904 = vrot.lane.b32.xlu0 %v2068_v55, %s1651_s5  ;;  %902 = vrot.lane.b32.xlu1 %v2066_v40, %s1651_s5 }
 0x1ed   :  { %920 = vrot.lane.b32.xlu0 %v2068_v55, %s1652_s6  ;;  %918 = vrot.lane.b32.xlu1 %v2066_v40, %s1652_s6 }
 0x1f1   :  { %945 = vrot.lane.b32.xlu0 %v2068_v55, %s1627_s22  ;;  %943 = vrot.lane.b32.xlu1 %v2066_v40, %s1627_s22  ;;  %s1656_s22 = smov 114  }
 0x1f5   :  { %961 = vrot.lane.b32.xlu0 %v2068_v55, %s1653_s1  ;;  %959 = vrot.lane.b32.xlu1 %v2066_v40, %s1653_s1  ;;  %s1664_s1 = smov 97  }
 0x1f9   :  { %977 = vrot.lane.b32.xlu0 %v2068_v55, %s1654_s7  ;;  %975 = vrot.lane.b32.xlu1 %v2066_v40, %s1654_s7 }
 0x1fd   :  { %993 = vrot.lane.b32.xlu0 %v2068_v55, %s1655_s8  ;;  %991 = vrot.lane.b32.xlu1 %v2066_v40, %s1655_s8 }
 0x201   :  { %1009 = vrot.lane.b32.xlu0 %v2068_v55, %s1656_s22  ;;  %1007 = vrot.lane.b32.xlu1 %v2066_v40, %s1656_s22  ;;  %s1665_s22 = smov 96  }
 0x203   :  { %v552_v20 = vpop.permute.xlu0 %551  ;;  %v550_v26 = vpop.permute.xlu1 %549 }
 0x204   :  { %v556_v63 = vsel %vm555_vm4, %v550_v26, %v552_v20  ;;  %v557_v10 = vsel %vm555_vm4, %v552_v20, %v550_v26  ;;  %v640_v26 = vcombine.high %v1440_v39, %v1440_v39  ;;  %vm810_vm4 = vcmp.lt.s32.totalorder %v2129_v43, 17 }
 0x205   :  { %1025 = vrot.lane.b32.xlu0 %v2068_v55, %s1657_s12  ;;  %1023 = vrot.lane.b32.xlu1 %v2066_v40, %s1657_s12  ;;  %v562_v6 = vmul.f32 %v558_v16, %v557_v10  ;;  %v563_v44 = vmul.f32 %v560_v9, %v556_v63  ;;  %v1441_v63 = vld [vmem:[%s2686_s3 + $0x30] sm:$0xff] }
 0x207   :  { %v569_v1 = vpop.permute.xlu0 %568  ;;  %v567_v5 = vpop.permute.xlu1 %566 }
 0x208   :  { %v571_v14 = vsel %vm570_vm5, %v567_v5, %v569_v1  ;;  %v572_v15 = vsel %vm570_vm5, %v569_v1, %v567_v5  ;;  %vm826_vm5 = vcmp.lt.s32.totalorder %v2129_v43, 16 }
 0x209   :  { %v578_v45 = vmul.f32 %v1436_v21, %v572_v15  ;;  %v579_v18 = vmul.f32 %v576_v2, %v571_v14  ;;  %1041 = vrot.lane.b32.xlu0 %v2068_v55, %s1658_s15  ;;  %1039 = vrot.lane.b32.xlu1 %v2066_v40, %s1658_s15  ;;  %v656_v15 = vcombine.high %v1441_v63, %v1441_v63 }
 0x20b   :  { %v580_v13 = vadd.f32 %v578_v45, %v562_v6  ;;  %v581_v37 = vadd.f32 %v579_v18, %v563_v44  ;;  %v585_v49 = vpop.permute.xlu0 %584  ;;  %v583_v33 = vpop.permute.xlu1 %582 }
 0x20c   :  { %v587_v56 = vsel %vm586_vm6, %v583_v33, %v585_v49  ;;  %v588_v22 = vsel %vm586_vm6, %v585_v49, %v583_v33  ;;  %vm842_vm6 = vcmp.lt.s32.totalorder %v2129_v43, 15 }
 0x20d   :  { %v594_v23 = vmul.f32 %v1437_v4, %v588_v22  ;;  %v595_v38 = vmul.f32 %v592_v41, %v587_v56  ;;  %1057 = vrot.lane.b32.xlu0 %v2068_v55, %s1659_s18  ;;  %1055 = vrot.lane.b32.xlu1 %v2066_v40, %s1659_s18  ;;  %v1442_v41 = vld [vmem:[%s2686_s3 + $0x38] sm:$0xff]  ;;  %v1443_v22 = vld [vmem:[%s2686_s3 + $0x40] sm:$0xff] }
 0x20e   :  { %v672_v56 = vcombine.high %v1442_v41, %v1442_v41 }
 0x20f   :  { %v596_v54 = vadd.f32 %v594_v23, %v580_v13  ;;  %v597_v24 = vadd.f32 %v595_v38, %v581_v37  ;;  %v601_v25 = vpop.permute.xlu0 %600  ;;  %v599_v36 = vpop.permute.xlu1 %598 }
 0x210   :  { %v603_v11 = vsel %vm602_vm7, %v599_v36, %v601_v25  ;;  %v604_v7 = vsel %vm602_vm7, %v601_v25, %v599_v36  ;;  %vm858_vm7 = vcmp.lt.s32.totalorder %v2129_v43, 14 }
 0x211   :  { %v610_v28 = vmul.f32 %v1438_v12, %v604_v7  ;;  %v611_v50 = vmul.f32 %v608_v52, %v603_v11  ;;  %1073 = vrot.lane.b32.xlu0 %v2068_v55, %s1660_s0  ;;  %1071 = vrot.lane.b32.xlu1 %v2066_v40, %s1660_s0  ;;  %v688_v11 = vcombine.high %v1443_v22, %v1443_v22  ;;  %v1444_v7 = vld [vmem:[%s2686_s3 + $0x48] sm:$0xff] }
 0x213   :  { %v612_v57 = vadd.f32 %v610_v28, %v596_v54  ;;  %v613_v42 = vadd.f32 %v611_v50, %v597_v24  ;;  %v617_v35 = vpop.permute.xlu0 %616  ;;  %v615_v59 = vpop.permute.xlu1 %614 }
 0x214   :  { %v619_v61 = vsel %vm618_vm8, %v615_v59, %v617_v35  ;;  %v620_v16 = vsel %vm618_vm8, %v617_v35, %v615_v59  ;;  %vm874_vm8 = vcmp.lt.s32.totalorder %v2129_v43, 13 }
 0x215   :  { %v626_v21 = vmul.f32 %v1439_v19, %v620_v16  ;;  %v627_v20 = vmul.f32 %v624_v58, %v619_v61  ;;  %1089 = vrot.lane.b32.xlu0 %v2068_v55, %s1661_s24  ;;  %1087 = vrot.lane.b32.xlu1 %v2066_v40, %s1661_s24  ;;  %v704_v61 = vcombine.high %v1444_v7, %v1444_v7  ;;  %v1445_v16 = vld [vmem:[%s2686_s3 + $0x50] sm:$0xff]  ;;  %s1672_s24 = smov 80  }
 0x217   :  { %v628_v10 = vadd.f32 %v626_v21, %v612_v57  ;;  %v629_v9 = vadd.f32 %v627_v20, %v613_v42  ;;  %v633_v2 = vpop.permute.xlu0 %632  ;;  %v631_v4 = vpop.permute.xlu1 %630 }
 0x218   :  { %v635_v1 = vsel %vm634_vm9, %v631_v4, %v633_v2  ;;  %v636_v5 = vsel %vm634_vm9, %v633_v2, %v631_v4  ;;  %vm890_vm9 = vcmp.lt.s32.totalorder %v2129_v43, 3 }
 0x219   :  { %v642_v6 = vmul.f32 %v1440_v39, %v636_v5  ;;  %v643_v14 = vmul.f32 %v640_v26, %v635_v1  ;;  %1105 = vrot.lane.b32.xlu0 %v2068_v55, %s1662_s27  ;;  %1103 = vrot.lane.b32.xlu1 %v2066_v40, %s1662_s27  ;;  %v720_v1 = vcombine.high %v1445_v16, %v1445_v16  ;;  %v1446_v5 = vld [vmem:[%s2686_s3 + $0x58] sm:$0xff]  ;;  %s1675_s27 = smov 77  }
 0x21b   :  { %v644_v44 = vadd.f32 %v642_v6, %v628_v10  ;;  %v645_v45 = vadd.f32 %v643_v14, %v629_v9  ;;  %v649_v18 = vpop.permute.xlu0 %648  ;;  %v647_v12 = vpop.permute.xlu1 %646 }
 0x21c   :  { %v651_v13 = vsel %vm650_vm10, %v647_v12, %v649_v18  ;;  %v652_v37 = vsel %vm650_vm10, %v649_v18, %v647_v12  ;;  %vm906_vm10 = vcmp.lt.s32.totalorder %v2129_v43, 2 }
 0x21d   :  { %v658_v49 = vmul.f32 %v1441_v63, %v652_v37  ;;  %v659_v33 = vmul.f32 %v656_v15, %v651_v13  ;;  %1121 = vrot.lane.b32.xlu0 %v2068_v55, %s1663_s30  ;;  %1119 = vrot.lane.b32.xlu1 %v2066_v40, %s1663_s30  ;;  %v736_v13 = vcombine.high %v1446_v5, %v1446_v5  ;;  %v1447_v37 = vld [vmem:[%s2686_s3 + $0x60] sm:$0xff] }
 0x21f   :  { %v660_v23 = vadd.f32 %v658_v49, %v644_v44  ;;  %v661_v38 = vadd.f32 %v659_v33, %v645_v45  ;;  %v665_v52 = vpop.permute.xlu0 %664  ;;  %v663_v19 = vpop.permute.xlu1 %662 }
 0x220   :  { %v667_v54 = vsel %vm666_vm11, %v663_v19, %v665_v52  ;;  %v668_v24 = vsel %vm666_vm11, %v665_v52, %v663_v19  ;;  %vm922_vm11 = vcmp.lt.s32.totalorder %v2129_v43, 1 }
 0x221   :  { %v674_v25 = vmul.f32 %v1442_v41, %v668_v24  ;;  %v675_v36 = vmul.f32 %v672_v56, %v667_v54  ;;  %1137 = vrot.lane.b32.xlu0 %v2068_v55, %s1664_s1  ;;  %1135 = vrot.lane.b32.xlu1 %v2066_v40, %s1664_s1  ;;  %v752_v54 = vcombine.high %v1447_v37, %v1447_v37  ;;  %v1448_v24 = vld [vmem:[%s2686_s3 + $0x68] sm:$0xff] }
 0x223   :  { %v676_v28 = vadd.f32 %v674_v25, %v660_v23  ;;  %v677_v50 = vadd.f32 %v675_v36, %v661_v38  ;;  %v681_v58 = vpop.permute.xlu0 %680  ;;  %v679_v39 = vpop.permute.xlu1 %678 }
 0x224   :  { %v683_v57 = vsel %vm682_vm12, %v679_v39, %v681_v58  ;;  %v684_v42 = vsel %vm682_vm12, %v681_v58, %v679_v39  ;;  %vm947_vm12 = vcmp.lt.s32.totalorder %v2129_v43, 127 }
 0x225   :  { %v690_v35 = vmul.f32 %v1443_v22, %v684_v42  ;;  %v691_v59 = vmul.f32 %v688_v11, %v683_v57  ;;  %1153 = vrot.lane.b32.xlu0 %v2068_v55, %s1665_s22  ;;  %1151 = vrot.lane.b32.xlu1 %v2066_v40, %s1665_s22  ;;  %v768_v57 = vcombine.high %v1448_v24, %v1448_v24  ;;  %v1449_v42 = vld [vmem:[%s2686_s3 + $0x70] sm:$0xff] }
 0x227   :  { %v692_v21 = vadd.f32 %v690_v35, %v676_v28  ;;  %v693_v20 = vadd.f32 %v691_v59, %v677_v50  ;;  %v697_v26 = vpop.permute.xlu0 %696  ;;  %v695_v63 = vpop.permute.xlu1 %694 }
 0x228   :  { %v699_v10 = vsel %vm698_vm13, %v695_v63, %v697_v26  ;;  %v700_v9 = vsel %vm698_vm13, %v697_v26, %v695_v63  ;;  %vm963_vm13 = vcmp.lt.s32.totalorder %v2129_v43, 126 }
 0x229   :  { %v706_v2 = vmul.f32 %v1444_v7, %v700_v9  ;;  %v707_v4 = vmul.f32 %v704_v61, %v699_v10  ;;  %1169 = vrot.lane.b32.xlu0 %v2068_v55, %s1666_s10  ;;  %1167 = vrot.lane.b32.xlu1 %v2066_v40, %s1666_s10  ;;  %v784_v10 = vcombine.high %v1449_v42, %v1449_v42 }
 0x22b   :  { %v708_v6 = vadd.f32 %v706_v2, %v692_v21  ;;  %v709_v14 = vadd.f32 %v707_v4, %v693_v20  ;;  %v713_v15 = vpop.permute.xlu0 %712  ;;  %v711_v41 = vpop.permute.xlu1 %710 }
 0x22c   :  { %v715_v44 = vsel %vm714_vm14, %v711_v41, %v713_v15  ;;  %v716_v45 = vsel %vm714_vm14, %v713_v15, %v711_v41  ;;  %vm979_vm14 = vcmp.lt.s32.totalorder %v2129_v43, 125 }
 0x22d   :  { %v722_v18 = vmul.f32 %v1445_v16, %v716_v45  ;;  %v723_v12 = vmul.f32 %v720_v1, %v715_v44  ;;  %1185 = vrot.lane.b32.xlu0 %v2068_v55, %s1667_s13  ;;  %1183 = vrot.lane.b32.xlu1 %v2066_v40, %s1667_s13 }
 0x22f   :  { %v724_v49 = vadd.f32 %v722_v18, %v708_v6  ;;  %v725_v33 = vadd.f32 %v723_v12, %v709_v14  ;;  %v729_v56 = vpop.permute.xlu0 %728  ;;  %v727_v22 = vpop.permute.xlu1 %726 }
 0x230   :  { %v731_v23 = vsel %vm730_vm15, %v727_v22, %v729_v56  ;;  %v732_v38 = vsel %vm730_vm15, %v729_v56, %v727_v22  ;;  %vm995_vm15 = vcmp.lt.s32.totalorder %v2129_v43, 115 }
 0x231   :  { %v738_v52 = vmul.f32 %v1446_v5, %v732_v38  ;;  %v739_v19 = vmul.f32 %v736_v13, %v731_v23  ;;  %1201 = vrot.lane.b32.xlu0 %v2068_v55, %s1668_s16  ;;  %1199 = vrot.lane.b32.xlu1 %v2066_v40, %s1668_s16 }
 0x233   :  { %v740_v25 = vadd.f32 %v738_v52, %v724_v49  ;;  %v741_v36 = vadd.f32 %v739_v19, %v725_v33  ;;  %v745_v11 = vpop.permute.xlu0 %744  ;;  %v743_v7 = vpop.permute.xlu1 %742 }
 0x234   :  { %v747_v28 = vsel %vm746_vm0, %v743_v7, %v745_v11  ;;  %v748_v50 = vsel %vm746_vm0, %v745_v11, %v743_v7  ;;  %vm1011_vm0 = vcmp.lt.s32.totalorder %v2129_v43, 114 }
 0x235   :  { %v754_v58 = vmul.f32 %v1447_v37, %v748_v50  ;;  %v755_v39 = vmul.f32 %v752_v54, %v747_v28  ;;  %1217 = vrot.lane.b32.xlu0 %v2068_v55, %s1669_s19  ;;  %1215 = vrot.lane.b32.xlu1 %v2066_v40, %s1669_s19 }
 0x237   :  { %v756_v35 = vadd.f32 %v754_v58, %v740_v25  ;;  %v757_v59 = vadd.f32 %v755_v39, %v741_v36  ;;  %v761_v61 = vpop.permute.xlu0 %760  ;;  %v759_v16 = vpop.permute.xlu1 %758 }
 0x238   :  { %v763_v21 = vsel %vm762_vm1, %v759_v16, %v761_v61  ;;  %v764_v20 = vsel %vm762_vm1, %v761_v61, %v759_v16  ;;  %vm1027_vm1 = vcmp.lt.s32.totalorder %v2129_v43, 113 }
 0x239   :  { %v770_v26 = vmul.f32 %v1448_v24, %v764_v20  ;;  %v771_v63 = vmul.f32 %v768_v57, %v763_v21  ;;  %1233 = vrot.lane.b32.xlu0 %v2068_v55, %s1670_s21  ;;  %1231 = vrot.lane.b32.xlu1 %v2066_v40, %s1670_s21  ;;  %v1451_v21 = vld [vmem:[%s2686_s3 + $0x80] sm:$0xff] }
 0x23b   :  { %v772_v9 = vadd.f32 %v770_v26, %v756_v35  ;;  %v773_v2 = vadd.f32 %v771_v63, %v757_v59  ;;  %v777_v4 = vpop.permute.xlu0 %776  ;;  %v775_v1 = vpop.permute.xlu1 %774  ;;  %v1450_v59 = vld [vmem:[%s2686_s3 + $0x78] sm:$0xff] }
 0x23c   :  { %v779_v5 = vsel %vm778_vm2, %v775_v1, %v777_v4  ;;  %v780_v6 = vsel %vm778_vm2, %v777_v4, %v775_v1  ;;  %v800_v20 = vcombine.high %v1450_v59, %v1450_v59  ;;  %vm1043_vm2 = vcmp.lt.s32.totalorder %v2129_v43, 112 }
 0x23d   :  { %v786_v14 = vmul.f32 %v1449_v42, %v780_v6  ;;  %v787_v15 = vmul.f32 %v784_v10, %v779_v5  ;;  %1249 = vrot.lane.b32.xlu0 %v2068_v55, %s1671_s23  ;;  %1247 = vrot.lane.b32.xlu1 %v2066_v40, %s1671_s23  ;;  %v1452_v10 = vld [vmem:[%s2686_s3 + $0x88] sm:$0xff]  ;;  %v1453_v6 = vld [vmem:[%s2686_s3 + $0x90] sm:$0xff] }
 0x23e   :  { %v848_v31 = vcombine.high %v1453_v6, %v1453_v6 }
 0x23f   :  { %v2223_v41 = vadd.f32 %v786_v14, %v772_v9  ;;  %v2225_v44 = vadd.f32 %v787_v15, %v773_v2  ;;  %v793_v45 = vpop.permute.xlu0 %792  ;;  %v791_v18 = vpop.permute.xlu1 %790  ;;  %v816_v9 = vcombine.high %v1451_v21, %v1451_v21 }
 0x240   :  { %v795_v26 = vsel %vm794_vm3, %v791_v18, %v793_v45  ;;  %v796_v63 = vsel %vm794_vm3, %v793_v45, %v791_v18  ;;  %v832_v45 = vcombine.high %v1452_v10, %v1452_v10  ;;  %v1454_v18 = vld [vmem:[%s2686_s3 + $0x98] sm:$0xff]  ;;  %vm1059_vm3 = vcmp.lt.s32.totalorder %v2129_v43, 111 }
 0x241   :  { %1265 = vrot.lane.b32.xlu0 %v2068_v55, %s1672_s24  ;;  %1263 = vrot.lane.b32.xlu1 %v2066_v40, %s1672_s24  ;;  %v802_v14 = vmul.f32 %v1450_v59, %v796_v63  ;;  %v803_v15 = vmul.f32 %v800_v20, %v795_v26  ;;  %v864_v63 = vcombine.high %v1454_v18, %v1454_v18 }
 0x243   :  { %v809_v12 = vpop.permute.xlu0 %808  ;;  %v807_v13 = vpop.permute.xlu1 %806 }
 0x244   :  { %v811_v1 = vsel %vm810_vm4, %v807_v13, %v809_v12  ;;  %v812_v5 = vsel %vm810_vm4, %v809_v12, %v807_v13  ;;  %v1455_v12 = vld [vmem:[%s2686_s3 + $0xa0] sm:$0xff]  ;;  %vm1075_vm4 = vcmp.lt.s32.totalorder %v2129_v43, 110 }
 0x245   :  { %1281 = vrot.lane.b32.xlu0 %v2068_v55, %s1673_s25  ;;  %1279 = vrot.lane.b32.xlu1 %v2066_v40, %s1673_s25  ;;  %v818_v34 = vmul.f32 %v1451_v21, %v812_v5  ;;  %v819_v62 = vmul.f32 %v816_v9, %v811_v1  ;;  %v1456_v1 = vld [vmem:[%s2686_s3 + $0xa8] sm:$0xff]  ;;  %v880_v30 = vcombine.high %v1455_v12, %v1455_v12 }
 0x247   :  { %v825_v37 = vpop.permute.xlu0 %824  ;;  %v823_v49 = vpop.permute.xlu1 %822 }
 0x248   :  { %v827_v32 = vsel %vm826_vm5, %v823_v49, %v825_v37  ;;  %v828_v47 = vsel %vm826_vm5, %v825_v37, %v823_v49  ;;  %v804_v37 = vadd.f32 %v802_v14, %v2223_v41  ;;  %v805_v49 = vadd.f32 %v803_v15, %v2225_v44  ;;  %v1457_v41 = vld [vmem:[%s2686_s3 + $0xb0] sm:$0xff] }
 0x249   :  { %1297 = vrot.lane.b32.xlu0 %v2068_v55, %s1674_s26  ;;  %1295 = vrot.lane.b32.xlu1 %v2066_v40, %s1674_s26  ;;  %v834_v21 = vmul.f32 %v1452_v10, %v828_v47  ;;  %v835_v9 = vmul.f32 %v832_v45, %v827_v32  ;;  %vm1091_vm5 = vcmp.lt.s32.totalorder %v2129_v43, 109 }
 0x24a   :  { %v820_v3 = vadd.f32 %v818_v34, %v804_v37  ;;  %v896_v34 = vcombine.high %v1456_v1, %v1456_v1 }
 0x24b   :  { %v841_v33 = vpop.permute.xlu0 %840  ;;  %v839_v56 = vpop.permute.xlu1 %838 }
 0x24c   :  { %v843_v20 = vsel %vm842_vm6, %v839_v56, %v841_v33  ;;  %v844_v26 = vsel %vm842_vm6, %v841_v33, %v839_v56  ;;  %v821_v33 = vadd.f32 %v819_v62, %v805_v49  ;;  %vm1107_vm6 = vcmp.lt.s32.totalorder %v2129_v43, 99 }
 0x24d   :  { %1313 = vrot.lane.b32.xlu0 %v2068_v55, %s1675_s27  ;;  %1311 = vrot.lane.b32.xlu1 %v2066_v40, %s1675_s27  ;;  %v850_v56 = vmul.f32 %v1453_v6, %v844_v26  ;;  %v851_v53 = vmul.f32 %v848_v31, %v843_v20  ;;  %v836_v31 = vadd.f32 %v834_v21, %v820_v3  ;;  %v1458_v6 = vld [vmem:[%s2686_s3 + $0xb8] sm:$0xff] }
 0x24f   :  { %v857_v22 = vpop.permute.xlu0 %856  ;;  %v855_v23 = vpop.permute.xlu1 %854  ;;  %v852_v3 = vadd.f32 %v850_v56, %v836_v31 }
 0x250   :  { %v859_v5 = vsel %vm858_vm7, %v855_v23, %v857_v22  ;;  %v860_v8 = vsel %vm858_vm7, %v857_v22, %v855_v23  ;;  %v837_v22 = vadd.f32 %v835_v9, %v821_v33  ;;  %vm1123_vm7 = vcmp.lt.s32.totalorder %v2129_v43, 98 }
 0x251   :  { %v866_v23 = vmul.f32 %v1454_v18, %v860_v8  ;;  %v867_v10 = vmul.f32 %v864_v63, %v859_v5 }
 0x252   :  { %v853_v8 = vadd.f32 %v851_v53, %v837_v22 }
 0x253   :  { %v2235_v38 = vpop.permute.xlu0 %872  ;;  %v2237_v52 = vpop.permute.xlu1 %870  ;;  %v868_v63 = vadd.f32 %v866_v23, %v852_v3 }
 0x254   :  { %v875_v32 = vsel %vm874_vm8, %v2237_v52, %v2235_v38  ;;  %v876_v62 = vsel %vm874_vm8, %v2235_v38, %v2237_v52  ;;  %v912_v52 = vcombine.high %v1457_v41, %v1457_v41  ;;  %v869_v37 = vadd.f32 %v867_v10, %v853_v8  ;;  %v1461_v10 = vld [vmem:[%s2686_s3 + $0xd0] sm:$0xff] }
 0x255   :  { %v882_v15 = vmul.f32 %v1455_v12, %v876_v62  ;;  %v883_v45 = vmul.f32 %v880_v30, %v875_v32  ;;  %vm1139_vm8 = vcmp.lt.s32.totalorder %v2129_v43, 97 }
 0x257   :  { %v2239_v19 = vpop.permute.xlu0 %888  ;;  %v2241_v54 = vpop.permute.xlu1 %886  ;;  %v884_v21 = vadd.f32 %v882_v15, %v868_v63  ;;  %v885_v9 = vadd.f32 %v883_v45, %v869_v37 }
 0x258   :  { %v891_v14 = vsel %vm890_vm9, %v2241_v54, %v2239_v19  ;;  %v892_v38 = vsel %vm890_vm9, %v2239_v19, %v2241_v54  ;;  %v928_v54 = vcombine.high %v1458_v6, %v1458_v6  ;;  %vm1155_vm9 = vcmp.lt.s32.totalorder %v2129_v43, 96 }
 0x259   :  { %v898_v53 = vmul.f32 %v1456_v1, %v892_v38  ;;  %v899_v12 = vmul.f32 %v896_v34, %v891_v14 }
 0x25b   :  { %v2243_v24 = vpop.permute.xlu0 %904  ;;  %v2245_v25 = vpop.permute.xlu1 %902  ;;  %v901_v1 = vadd.f32 %v899_v12, %v885_v9 }
 0x25c   :  { %v907_v26 = vsel %vm906_vm10, %v2245_v25, %v2243_v24  ;;  %v908_v19 = vsel %vm906_vm10, %v2243_v24, %v2245_v25  ;;  %v1459_v24 = vld [vmem:[%s2686_s3 + $0xc0] sm:$0xff]  ;;  %v900_v25 = vadd.f32 %v898_v53, %v884_v21  ;;  %vm1171_vm10 = vcmp.lt.s32.totalorder %v2129_v43, 95 }
 0x25d   :  { %v914_v5 = vmul.f32 %v1457_v41, %v908_v19  ;;  %v915_v33 = vmul.f32 %v912_v52, %v907_v26  ;;  %v937_v41 = vcombine.high %v1459_v24, %v1459_v24  ;;  %v1462_v52 = vld [vmem:[%s2686_s3 + $0xd8] sm:$0xff]  ;;  %v939_v45 = vmul.f32 %v1459_v24, %v2066_v40  ;;  %v1463_v40 = vld [vmem:[%s2686_s3 + $0xe0] sm:$0xff] }
 0x25e   :  { %v969_v26 = vcombine.high %v1461_v10, %v1461_v10  ;;  %v985_v53 = vcombine.high %v1462_v52, %v1462_v52  ;;  %v1001_v9 = vcombine.high %v1463_v40, %v1463_v40 }
 0x25f   :  { %v2247_v36 = vpop.permute.xlu0 %920  ;;  %v2249_v11 = vpop.permute.xlu1 %918  ;;  %v917_v31 = vadd.f32 %v915_v33, %v901_v1  ;;  %v940_v15 = vmul.f32 %v937_v41, %v2068_v55 }
 0x260   :  { %v923_v30 = vsel %vm922_vm11, %v2249_v11, %v2247_v36  ;;  %v924_v49 = vsel %vm922_vm11, %v2247_v36, %v2249_v11  ;;  %v1460_v36 = vld [vmem:[%s2686_s3 + $0xc8] sm:$0xff]  ;;  %v916_v11 = vadd.f32 %v914_v5, %v900_v25  ;;  %v1465_v5 = vld [vmem:[%s2686_s3 + $0xf0] sm:$0xff]  ;;  %vm1187_vm11 = vcmp.lt.s32.totalorder %v2129_v43, 94 }
 0x261   :  { %v930_v62 = vmul.f32 %v1458_v6, %v924_v49  ;;  %v931_v34 = vmul.f32 %v928_v54, %v923_v30  ;;  %v953_v38 = vcombine.high %v1460_v36, %v1460_v36  ;;  %v1464_v30 = vld [vmem:[%s2686_s3 + $0xe8] sm:$0xff] }
 0x263   :  { %v2251_v7 = vpop.permute.xlu0 %945  ;;  %v2253_v28 = vpop.permute.xlu1 %943  ;;  %v932_v14 = vadd.f32 %v930_v62, %v916_v11  ;;  %v933_v6 = vadd.f32 %v931_v34, %v917_v31  ;;  %v1466_v11 = vld [vmem:[%s2686_s3 + $0xf8] sm:$0xff] }
 0x264   :  { %v948_v3 = vsel %vm947_vm12, %v2253_v28, %v2251_v7  ;;  %v949_v8 = vsel %vm947_vm12, %v2251_v7, %v2253_v28  ;;  %vm1203_vm12 = vcmp.lt.s32.totalorder %v2129_v43, 93 }
 0x265   :  { %v942_v55 = vadd.f32 %v940_v15, %v933_v6  ;;  %v941_v7 = vadd.f32 %v939_v45, %v932_v14  ;;  %v955_v28 = vmul.f32 %v1460_v36, %v948_v3  ;;  %v956_v12 = vmul.f32 %v953_v38, %v949_v8  ;;  %v1467_v38 = vld [vmem:[%s2686_s3 + $0x100] sm:$0xff] }
 0x266   :  { %v1049_v8 = vcombine.high %v1466_v11, %v1466_v11 }
 0x267   :  { %v2255_v50 = vpop.permute.xlu0 %961  ;;  %v2257_v58 = vpop.permute.xlu1 %959  ;;  %v957_v1 = vadd.f32 %v955_v28, %v941_v7  ;;  %v958_v62 = vadd.f32 %v956_v12, %v942_v55  ;;  %v1469_v12 = vld [vmem:[%s2686_s3 + $0x110] sm:$0xff] }
 0x268   :  { %v964_v63 = vsel %vm963_vm13, %v2257_v58, %v2255_v50  ;;  %v965_v37 = vsel %vm963_vm13, %v2255_v50, %v2257_v58  ;;  %vm1219_vm13 = vcmp.lt.s32.totalorder %v2129_v43, 83 }
 0x269   :  { %v971_v58 = vmul.f32 %v1461_v10, %v964_v63  ;;  %v972_v21 = vmul.f32 %v969_v26, %v965_v37  ;;  %v1033_v10 = vcombine.high %v1465_v5, %v1465_v5  ;;  %v1468_v37 = vld [vmem:[%s2686_s3 + $0x108] sm:$0xff] }
 0x26b   :  { %v2259_v39 = vpop.permute.xlu0 %977  ;;  %v2261_v57 = vpop.permute.xlu1 %975 }
 0x26c   :  { %v980_v49 = vsel %vm979_vm14, %v2261_v57, %v2259_v39  ;;  %v981_v50 = vsel %vm979_vm14, %v2259_v39, %v2261_v57  ;;  %v1017_v57 = vcombine.high %v1464_v30, %v1464_v30  ;;  %vm1235_vm14 = vcmp.lt.s32.totalorder %v2129_v43, 82 }
 0x26d   :  { %v987_v34 = vmul.f32 %v1462_v52, %v980_v49  ;;  %v988_v36 = vmul.f32 %v985_v53, %v981_v50  ;;  %v1081_v50 = vcombine.high %v1468_v37, %v1468_v37 }
 0x26f   :  { %v2263_v42 = vpop.permute.xlu0 %993  ;;  %v2265_v35 = vpop.permute.xlu1 %991 }
 0x270   :  { %v996_v25 = vsel %vm995_vm15, %v2265_v35, %v2263_v42  ;;  %v997_v39 = vsel %vm995_vm15, %v2263_v42, %v2265_v35  ;;  %v973_v42 = vadd.f32 %v971_v58, %v957_v1  ;;  %v974_v35 = vadd.f32 %v972_v21, %v958_v62 }
 0x271   :  { %v1003_v14 = vmul.f32 %v1463_v40, %v996_v25  ;;  %v1004_v6 = vmul.f32 %v1001_v9, %v997_v39  ;;  %v1470_v25 = vld [vmem:[%s2686_s3 + $0x118] sm:$0xff]  ;;  %vm1251_vm15 = vcmp.lt.s32.totalorder %v2129_v43, 81 }
 0x272   :  { %v989_v15 = vadd.f32 %v987_v34, %v973_v42  ;;  %v990_v45 = vadd.f32 %v988_v36, %v974_v35  ;;  %v1471_v36 = vld [vmem:[%s2686_s3 + $0x120] sm:$0xff] }
 0x273   :  { %v2271_v61 = vpop.permute.xlu0 %1009  ;;  %v2273_v16 = vpop.permute.xlu1 %1007 }
 0x274   :  { %v1012_v31 = vsel %vm1011_vm0, %v2273_v16, %v2271_v61  ;;  %v1013_v41 = vsel %vm1011_vm0, %v2271_v61, %v2273_v16  ;;  %v1005_v40 = vadd.f32 %v1003_v14, %v989_v15  ;;  %v1006_v55 = vadd.f32 %v1004_v6, %v990_v45  ;;  %v1472_v6 = vld [vmem:[%s2686_s3 + $0x128] sm:$0xff]  ;;  %v1473_v45 = vld [vmem:[%s2686_s3 + $0x130] sm:$0xff] }
 0x275   :  { %v1019_v26 = vmul.f32 %v1464_v30, %v1012_v31  ;;  %v1020_v63 = vmul.f32 %v1017_v57, %v1013_v41  ;;  %v1113_v41 = vcombine.high %v1470_v25, %v1470_v25  ;;  %vm1267_vm0 = vcmp.lt.s32.totalorder %v2129_v43, 80 }
 0x277   :  { %v2283_v2 = vpop.permute.xlu0 %1025  ;;  %v2285_v4 = vpop.permute.xlu1 %1023  ;;  %v1021_v58 = vadd.f32 %v1019_v26, %v1005_v40  ;;  %v1022_v21 = vadd.f32 %v1020_v63, %v1006_v55  ;;  %v1474_v55 = vld [vmem:[%s2686_s3 + $0x138] sm:$0xff] }
 0x278   :  { %v1028_v61 = vsel %vm1027_vm1, %v2285_v4, %v2283_v2  ;;  %v1029_v16 = vsel %vm1027_vm1, %v2283_v2, %v2285_v4  ;;  %v1065_v4 = vcombine.high %v1467_v38, %v1467_v38  ;;  %vm1283_vm1 = vcmp.lt.s32.totalorder %v2129_v43, 79 }
 0x279   :  { %v1035_v7 = vmul.f32 %v1465_v5, %v1028_v61  ;;  %v1036_v28 = vmul.f32 %v1033_v10, %v1029_v16 }
 0x27b   :  { %v2298_v13 = vpop.permute.xlu0 %1041  ;;  %v2300_v59 = vpop.permute.xlu1 %1039  ;;  %v1037_v57 = vadd.f32 %v1035_v7, %v1021_v58  ;;  %v1038_v1 = vadd.f32 %v1036_v28, %v1022_v21 }
 0x27c   :  { %v1044_v53 = vsel %vm1043_vm2, %v2300_v59, %v2298_v13  ;;  %v1045_v2 = vsel %vm1043_vm2, %v2298_v13, %v2300_v59  ;;  %vm1299_vm2 = vcmp.lt.s32.totalorder %v2129_v43, 78 }
 0x27d   :  { %v1051_v9 = vmul.f32 %v1466_v11, %v1044_v53  ;;  %v1052_v5 = vmul.f32 %v1049_v8, %v1045_v2 }
 0x27f   :  { %v2312_v44 = vpop.permute.xlu0 %1057  ;;  %v2314_v47 = vpop.permute.xlu1 %1055  ;;  %v1053_v10 = vadd.f32 %v1051_v9, %v1037_v57  ;;  %v1054_v42 = vadd.f32 %v1052_v5, %v1038_v1 }
 0x280   :  { %v1060_v13 = vsel %vm1059_vm3, %v2314_v47, %v2312_v44  ;;  %v1061_v59 = vsel %vm1059_vm3, %v2312_v44, %v2314_v47  ;;  %v1097_v47 = vcombine.high %v1469_v12, %v1469_v12  ;;  %vm1315_vm3 = vcmp.lt.s32.totalorder %v2129_v43, 77 }
 0x281   :  { %v1067_v62 = vmul.f32 %v1467_v38, %v1060_v13  ;;  %v1068_v34 = vmul.f32 %v1065_v4, %v1061_v59 }
 0x283   :  { %v2337_v18 = vpop.permute.xlu0 %1073  ;;  %v2339_v20 = vpop.permute.xlu1 %1071  ;;  %v1069_v61 = vadd.f32 %v1067_v62, %v1053_v10  ;;  %v1070_v16 = vadd.f32 %v1068_v34, %v1054_v42 }
 0x284   :  { %v1076_v39 = vsel %vm1075_vm4, %v2339_v20, %v2337_v18  ;;  %v1077_v44 = vsel %vm1075_vm4, %v2337_v18, %v2339_v20 }
 0x285   :  { %v1083_v35 = vmul.f32 %v1468_v37, %v1076_v39  ;;  %v1084_v14 = vmul.f32 %v1081_v50, %v1077_v44  ;;  %v1475_v50 = vld [vmem:[%s2686_s3 + $0x140] sm:$0xff] }
 0x287   :  { %v2353_v56 = vpop.permute.xlu0 %1089  ;;  %v2355_v32 = vpop.permute.xlu1 %1087  ;;  %v1085_v53 = vadd.f32 %v1083_v35, %v1069_v61  ;;  %v1086_v2 = vadd.f32 %v1084_v14, %v1070_v16 }
 0x288   :  { %v1092_v18 = vsel %vm1091_vm5, %v2355_v32, %v2353_v56  ;;  %v1093_v20 = vsel %vm1091_vm5, %v2353_v56, %v2355_v32  ;;  %v1129_v32 = vcombine.high %v1471_v36, %v1471_v36 }
 0x289   :  { %v1099_v8 = vmul.f32 %v1469_v12, %v1092_v18  ;;  %v1100_v15 = vmul.f32 %v1097_v47, %v1093_v20  ;;  %v1476_v47 = vld [vmem:[%s2686_s3 + $0x148] sm:$0xff]  ;;  %v1477_v18 = vld [vmem:[%s2686_s3 + $0x150] sm:$0xff] }
 0x28a   :  { %v1225_v61 = vcombine.high %v1477_v18, %v1477_v18 }
 0x28b   :  { %v2364_v22 = vpop.permute.xlu0 %1105  ;;  %v2366_v23 = vpop.permute.xlu1 %1103  ;;  %v1101_v28 = vadd.f32 %v1099_v8, %v1085_v53  ;;  %v1102_v12 = vadd.f32 %v1100_v15, %v1086_v2 }
 0x28c   :  { %v1108_v38 = vsel %vm1107_vm6, %v2366_v23, %v2364_v22  ;;  %v1109_v56 = vsel %vm1107_vm6, %v2364_v22, %v2366_v23  ;;  %v1145_v23 = vcombine.high %v1472_v6, %v1472_v6 }
 0x28d   :  { %v1115_v4 = vmul.f32 %v1470_v25, %v1108_v38  ;;  %v1116_v40 = vmul.f32 %v1113_v41, %v1109_v56  ;;  %v1478_v38 = vld [vmem:[%s2686_s3 + $0x158] sm:$0xff] }
 0x28f   :  { %v2382_v19 = vpop.permute.xlu0 %1121  ;;  %v2384_v54 = vpop.permute.xlu1 %1119  ;;  %v1117_v5 = vadd.f32 %v1115_v4, %v1101_v28  ;;  %v1118_v25 = vadd.f32 %v1116_v40, %v1102_v12  ;;  %v1480_v40 = vld [vmem:[%s2686_s3 + $0x168] sm:$0xff] }
 0x290   :  { %v1124_v37 = vsel %vm1123_vm7, %v2384_v54, %v2382_v19  ;;  %v1125_v22 = vsel %vm1123_vm7, %v2382_v19, %v2384_v54  ;;  %v1161_v54 = vcombine.high %v1473_v45, %v1473_v45 }
 0x291   :  { %v1131_v13 = vmul.f32 %v1471_v36, %v1124_v37  ;;  %v1132_v59 = vmul.f32 %v1129_v32, %v1125_v22 }
 0x293   :  { %v2405_v33 = vpop.permute.xlu0 %1137  ;;  %v2407_v24 = vpop.permute.xlu1 %1135  ;;  %v1133_v1 = vadd.f32 %v1131_v13, %v1117_v5  ;;  %v1134_v62 = vadd.f32 %v1132_v59, %v1118_v25 }
 0x294   :  { %v1140_v7 = vsel %vm1139_vm8, %v2407_v24, %v2405_v33  ;;  %v1141_v19 = vsel %vm1139_vm8, %v2405_v33, %v2407_v24  ;;  %v1177_v24 = vcombine.high %v1474_v55, %v1474_v55 }
 0x295   :  { %v1147_v39 = vmul.f32 %v1472_v6, %v1140_v7  ;;  %v1148_v44 = vmul.f32 %v1145_v23, %v1141_v19 }
 0x297   :  { %v2429_v52 = vpop.permute.xlu0 %1153  ;;  %v2431_v3 = vpop.permute.xlu1 %1151  ;;  %v1149_v42 = vadd.f32 %v1147_v39, %v1133_v1  ;;  %v1150_v35 = vadd.f32 %v1148_v44, %v1134_v62  ;;  %v1482_v44 = vld [vmem:[%s2686_s3 + $0x178] sm:$0xff] }
 0x298   :  { %v1156_v9 = vsel %vm1155_vm9, %v2431_v3, %v2429_v52  ;;  %v1157_v33 = vsel %vm1155_vm9, %v2429_v52, %v2431_v3  ;;  %v1193_v3 = vcombine.high %v1475_v50, %v1475_v50 }
 0x299   :  { %v1163_v34 = vmul.f32 %v1473_v45, %v1156_v9  ;;  %v1164_v36 = vmul.f32 %v1161_v54, %v1157_v33  ;;  %v1479_v45 = vld [vmem:[%s2686_s3 + $0x160] sm:$0xff]  ;;  %v1273_v33 = vcombine.high %v1480_v40, %v1480_v40 }
 0x29a   :  { %v1257_v19 = vcombine.high %v1479_v45, %v1479_v45 }
 0x29b   :  { %v2457_v30 = vpop.permute.xlu0 %1169  ;;  %v2459_v49 = vpop.permute.xlu1 %1167 }
 0x29c   :  { %v1172_v57 = vsel %vm1171_vm10, %v2459_v49, %v2457_v30  ;;  %v1173_v52 = vsel %vm1171_vm10, %v2457_v30, %v2459_v49  ;;  %v1209_v49 = vcombine.high %v1476_v47, %v1476_v47 }
 0x29d   :  { %v1179_v14 = vmul.f32 %v1474_v55, %v1172_v57  ;;  %v1180_v6 = vmul.f32 %v1177_v24, %v1173_v52 }
 0x29f   :  { %v2485_v11 = vpop.permute.xlu0 %1185  ;;  %v2487_v31 = vpop.permute.xlu1 %1183 }
 0x2a0   :  { %v1188_v10 = vsel %vm1187_vm11, %v2487_v31, %v2485_v11  ;;  %v1189_v30 = vsel %vm1187_vm11, %v2485_v11, %v2487_v31  ;;  %v1165_v11 = vadd.f32 %v1163_v34, %v1149_v42  ;;  %v1166_v31 = vadd.f32 %v1164_v36, %v1150_v35 }
 0x2a1   :  { %v1195_v16 = vmul.f32 %v1475_v50, %v1188_v10  ;;  %v1196_v8 = vmul.f32 %v1193_v3, %v1189_v30  ;;  %v1305_v10 = vcombine.high %v1482_v44, %v1482_v44 }
 0x2a2   :  { %v1182_v53 = vadd.f32 %v1180_v6, %v1166_v31 }
 0x2a3   :  { %v1202_v26 = vpop.permute.xlu0 %1201  ;;  %v1200_v63 = vpop.permute.xlu1 %1199 }
 0x2a4   :  { %v1204_v56 = vsel %vm1203_vm12, %v1200_v63, %v1202_v26  ;;  %v1205_v32 = vsel %vm1203_vm12, %v1202_v26, %v1200_v63  ;;  %v1241_v26 = vcombine.high %v1478_v38, %v1478_v38  ;;  %v1181_v63 = vadd.f32 %v1179_v14, %v1165_v11  ;;  %v1483_v14 = vld [vmem:[%s2686_s3 + $0x180] sm:$0xff] }
 0x2a5   :  { %v1211_v2 = vmul.f32 %v1476_v47, %v1204_v56  ;;  %v1212_v4 = vmul.f32 %v1209_v49, %v1205_v32  ;;  %v1198_v28 = vadd.f32 %v1196_v8, %v1182_v53  ;;  %v1321_v8 = vcombine.high %v1483_v14, %v1483_v14 }
 0x2a6   :  { %v1197_v54 = vadd.f32 %v1195_v16, %v1181_v63 }
 0x2a7   :  { %v1218_v58 = vpop.permute.xlu0 %1217  ;;  %v1216_v21 = vpop.permute.xlu1 %1215  ;;  %v1214_v5 = vadd.f32 %v1212_v4, %v1198_v28 }
 0x2a8   :  { %v1220_v22 = vsel %vm1219_vm13, %v1216_v21, %v1218_v58  ;;  %v1221_v23 = vsel %vm1219_vm13, %v1218_v58, %v1216_v21  ;;  %v1481_v58 = vld [vmem:[%s2686_s3 + $0x170] sm:$0xff]  ;;  %v1213_v24 = vadd.f32 %v1211_v2, %v1197_v54 }
 0x2a9   :  { %v1227_v12 = vmul.f32 %v1477_v18, %v1220_v22  ;;  %v1228_v13 = vmul.f32 %v1225_v61, %v1221_v23  ;;  %v1289_v52 = vcombine.high %v1481_v58, %v1481_v58 }
 0x2ab   :  { %v1234_v20 = vpop.permute.xlu0 %1233  ;;  %v1232_v41 = vpop.permute.xlu1 %1231  ;;  %v1229_v3 = vadd.f32 %v1227_v12, %v1213_v24  ;;  %v1230_v1 = vadd.f32 %v1228_v13, %v1214_v5  ;;  %v1676_v5 = vmov 1966171168  }
 0x2ac   :  { %v1236_v55 = vsel %vm1235_vm14, %v1232_v41, %v1234_v20  ;;  %v1237_v7 = vsel %vm1235_vm14, %v1234_v20, %v1232_v41 }
 0x2ad   :  { %v1243_v25 = vmul.f32 %v1478_v38, %v1236_v55  ;;  %v1244_v39 = vmul.f32 %v1241_v26, %v1237_v7 }
 0x2af   :  { %v1250_v15 = vpop.permute.xlu0 %1249  ;;  %v1248_v37 = vpop.permute.xlu1 %1247  ;;  %v1245_v30 = vadd.f32 %v1243_v25, %v1229_v3  ;;  %v1246_v49 = vadd.f32 %v1244_v39, %v1230_v1  ;;  %v1351_v25 = vunpack.c.l.s4 %v1676_v5 }
 0x2b0   :  { %v1252_v21 = vsel %vm1251_vm15, %v1248_v37, %v1250_v15  ;;  %v1253_v9 = vsel %vm1251_vm15, %v1250_v15, %v1248_v37 }
 0x2b1   :  { %v1259_v62 = vmul.f32 %v1479_v45, %v1252_v21  ;;  %v1260_v34 = vmul.f32 %v1257_v19, %v1253_v9  ;;  %v1352_v39 = vunpack.c.0.s8 %v1351_v25 }
 0x2b3   :  { %v1266_v59 = vpop.permute.xlu0 %1265  ;;  %v1264_v50 = vpop.permute.xlu1 %1263  ;;  %v1261_v6 = vadd.f32 %v1259_v62, %v1245_v30  ;;  %v1262_v38 = vadd.f32 %v1260_v34, %v1246_v49 }
 0x2b4   :  { %v1268_v47 = vsel %vm1267_vm0, %v1264_v50, %v1266_v59  ;;  %v1269_v57 = vsel %vm1267_vm0, %v1266_v59, %v1264_v50 }
 0x2b5   :  { %v1275_v42 = vmul.f32 %v1480_v40, %v1268_v47  ;;  %v1276_v35 = vmul.f32 %v1273_v33, %v1269_v57 }
 0x2b7   :  { %v1282_v36 = vpop.permute.xlu0 %1281  ;;  %v1280_v18 = vpop.permute.xlu1 %1279  ;;  %v1277_v15 = vadd.f32 %v1275_v42, %v1261_v6  ;;  %v1278_v45 = vadd.f32 %v1276_v35, %v1262_v38 }
 0x2b8   :  { %v1284_v20 = vsel %vm1283_vm1, %v1280_v18, %v1282_v36  ;;  %v1285_v41 = vsel %vm1283_vm1, %v1282_v36, %v1280_v18 }
 0x2b9   :  { %v1291_v56 = vmul.f32 %v1481_v58, %v1284_v20  ;;  %v1292_v32 = vmul.f32 %v1289_v52, %v1285_v41 }
 0x2bb   :  { %v1298_v61 = vpop.permute.xlu0 %1297  ;;  %v1296_v11 = vpop.permute.xlu1 %1295  ;;  %v1293_v23 = vadd.f32 %v1291_v56, %v1277_v15  ;;  %v1294_v26 = vadd.f32 %v1292_v32, %v1278_v45  ;;  %v2718_v45 = vld [vmem:[#allocation2_spill] sm:$0xff] }
 0x2bc   :  { %v1300_v31 = vsel %vm1299_vm2, %v1296_v11, %v1298_v61  ;;  %v1301_v16 = vsel %vm1299_vm2, %v1298_v61, %v1296_v11 }
 0x2bd   :  { %v1307_v37 = vmul.f32 %v1482_v44, %v1300_v31  ;;  %v1308_v22 = vmul.f32 %v1305_v10, %v1301_v16  ;;  %v2711_v44 = vlaneseq  ;;  %v2712_v31 = vld [vmem:[#allocation4_spill] sm:$0xff] }
 0x2bf   :  { %v1314_v63 = vpop.permute.xlu0 %1313  ;;  %v1312_v53 = vpop.permute.xlu1 %1311  ;;  %v1309_v40 = vadd.f32 %v1307_v37, %v1293_v23  ;;  %v1310_v55 = vadd.f32 %v1308_v22, %v1294_v26  ;;  %v1354_v47 = vshrl.u32 %v2711_v44, 7  ;;  %v2719_v22 = vld [vmem:[#allocation3_spill] sm:$0xff] }
 0x2c0   :  { %v1316_v2 = vsel %vm1315_vm3, %v1312_v53, %v1314_v63  ;;  %v1317_v4 = vsel %vm1315_vm3, %v1314_v63, %v1312_v53 }
 0x2c1   :  { %v1323_v7 = vmul.f32 %v1483_v14, %v1316_v2  ;;  %v1324_v19 = vmul.f32 %v1321_v8, %v1317_v4  ;;  %v1355_v52 = vsub.s32 %v1352_v39, %v1354_v47  ;;  %v1374_v62 = vsub.s32 0, %v1354_v47  ;;  %v2713_v8 = vld [vmem:[#allocation5_spill] sm:$0xff] }
 0x2c2   :  { %v1378_v34 = vsub.s32 1, %v1354_v47 }
 0x2c3   :  { %v1325_v54 = vadd.f32 %v1323_v7, %v1309_v40  ;;  %v1326_v28 = vadd.f32 %v1324_v19, %v1310_v55 }
 0x2c5   :  { %v1329_v12 = vrot.slane %v1325_v54, 2  ;;  %v1330_v13 = vrot.slane %v1326_v28, 2 }
 0x2c7   :  { %v1333_v43 = vadd.f32 %v1329_v12, %v1325_v54  ;;  %v1334_v59 = vadd.f32 %v1330_v13, %v1326_v28 }
 0x2c9   :  { %v1484_v50 = vmul.f32 -1.442695, %v1333_v43  ;;  %v1485_v58 = vmul.f32 -1.442695, %v1334_v59 }
 0x2cb   :  { %1619 = vpow2.f32 %v1484_v50 }
 0x2cc   :  { %1621 = vpow2.f32 %v1485_v58 }
 0x2d8   :  { %v1620_v21 = vpop.eup %1619 }
 0x2d9   :  { %v1622_v9 = vpop.eup %1621  ;;  %v1341_v33 = vadd.f32 1.0, %v1620_v21 }
 0x2da   :  { %v1342_v24 = vadd.f32 1.0, %v1622_v9 }
 0x2db   :  { %1623 = vrcp.f32 %v1341_v33 }
 0x2dc   :  { %1625 = vrcp.f32 %v1342_v24 }
 0x2e8   :  { %v1624_v57 = vpop.eup %1623 }
 0x2e9   :  { %v1626_v3 = vpop.eup %1625 }
 0x2ea   :  { %v1349_v1 = vcombine.low %v1624_v57, %v1626_v3 }
 0x2ec   :  { %v1356_v36 = vrot.slane %v1349_v1, %v1355_v52 }
 0x2ee   :  { %v1357_v18 = vcombine.high %v1356_v36, %v1356_v36  ;;  %v1364_v20 = vrot.slane %v1356_v36, %v1355_v52 }
 0x2f0   :  { %v1371_v41 = vrot.slane %v1357_v18, %v1355_v52  ;;  %v1375_v10 = vrot.slane %v1364_v20, %v1374_v62  ;;  %v1379_v30 = vrot.slane %v1364_v20, %v1378_v34 }
 0x2f2   :  { %v1383_v49 = vrot.slane %v1371_v41, %v1374_v62  ;;  %v1387_v42 = vrot.slane %v1371_v41, %v1378_v34  ;;  %v1392_v35 = vmul.f32 %v1375_v10, %v1993_v29  ;;  %v1393_v14 = vmul.f32 %v1379_v30, %v1996_v51  ;;  %v2715_v29 = vld [vmem:[#allocation7_spill] sm:$0xff] }
 0x2f3   :  { %v1394_v6 = vmul.f32 %v1375_v10, %v1987_v60  ;;  %v1395_v38 = vmul.f32 %v1379_v30, %v1990_v27  ;;  %v1396_v56 = vmul.f32 %v1375_v10, %v2015_v17  ;;  %v1397_v32 = vmul.f32 %v1379_v30, %v2018_v0  ;;  %v2714_v60 = vld [vmem:[#allocation6_spill] sm:$0xff]  ;;  %v2716_v17 = vld [vmem:[#allocation8_spill] sm:$0xff] }
 0x2f4   :  { %v1398_v61 = vmul.f32 %v1375_v10, %v2045_v46  ;;  %v1399_v11 = vmul.f32 %v1379_v30, %v2048_v48  ;;  %v1400_v16 = vmul.f32 %v1383_v49, %v2712_v31  ;;  %v1401_v15 = vmul.f32 %v1387_v42, %v2713_v8  ;;  %1408 = vst [vmem:[%s2687_s4] sm:$0xff] %v1392_v35  ;;  %v2717_v46 = vld [vmem:[#allocation9_spill] sm:$0xff] }
 0x2f5   :  { %1409 = vst [vmem:[%s2687_s4 + $0x8] sm:$0xff] %v1393_v14  ;;  %v1402_v27 = vmul.f32 %v1383_v49, %v2714_v60  ;;  %v1403_v51 = vmul.f32 %v1387_v42, %v2715_v29  ;;  %v1404_v0 = vmul.f32 %v1383_v49, %v2716_v17  ;;  %v1405_v48 = vmul.f32 %v1387_v42, %v2717_v46 }
 0x2f6   :  { %1410 = vst [vmem:[%s2687_s4 + $0x10] sm:$0xff] %v1394_v6  ;;  %1411 = vst [vmem:[%s2687_s4 + $0x18] sm:$0xff] %v1395_v38  ;;  %v1406_v37 = vmul.f32 %v1383_v49, %v2718_v45  ;;  %v1407_v23 = vmul.f32 %v1387_v42, %v2719_v22 }
 0x2f7   :  { %1412 = vst [vmem:[%s2687_s4 + $0x20] sm:$0xff] %v1396_v56  ;;  %1413 = vst [vmem:[%s2687_s4 + $0x28] sm:$0xff] %v1397_v32 }
 0x2f8   :  { %1414 = vst [vmem:[%s2687_s4 + $0x30] sm:$0xff] %v1398_v61  ;;  %1415 = vst [vmem:[%s2687_s4 + $0x38] sm:$0xff] %v1399_v11 }
 0x2f9   :  { %1416 = vst [vmem:[%s2687_s4 + $0x40] sm:$0xff] %v1400_v16  ;;  %1417 = vst [vmem:[%s2687_s4 + $0x48] sm:$0xff] %v1401_v15 }
 0x2fa   :  { %1418 = vst [vmem:[%s2687_s4 + $0x50] sm:$0xff] %v1402_v27  ;;  %1419 = vst [vmem:[%s2687_s4 + $0x58] sm:$0xff] %v1403_v51 }
 0x2fb   :  { %1420 = vst [vmem:[%s2687_s4 + $0x60] sm:$0xff] %v1404_v0  ;;  %1421 = vst [vmem:[%s2687_s4 + $0x68] sm:$0xff] %v1405_v48 }
 0x2fc   :  { %1422 = vst [vmem:[%s2687_s4 + $0x70] sm:$0xff] %v1406_v37  ;;  %1423 = vst [vmem:[%s2687_s4 + $0x78] sm:$0xff] %v1407_v23 }

</bundles_post_ra>
